<compile_context>
chip_gen: v7x
topology: tpu7x:2x2x1
jax: 0.10.0
libtpu: 0.0.40
codegen_flags: <defaults>
</compile_context>

<pallas_src>
import jax
import jax.numpy as jnp
from jax.experimental import pallas as pl
from jax.experimental.pallas import tpu as pltpu

D_MODEL = 384
Z_DIM = 512
G_DIM = 4
LN_EPS = 1e-5


def token_embedder_kernel(z_ref, g_ref, wz_ref, wg_ref, p_ref, o_ref):
    # z_ref: (tb, 512) input dtype; wz_ref: (512, d_model) compute dtype
    # g_ref: (tb, 4);               wg_ref: (4, d_model) f32
    # p_ref: (8, d_model) f32 -- row 0: bz+bg, row 1: gamma, row 2: beta
    z = z_ref[...].astype(wz_ref.dtype)
    # Main projection: bf16 (default) single-pass MXU matmul, f32 accumulation.
    x = jnp.dot(z, wz_ref[...], preferred_element_type=jnp.float32)
    # K=4 g-projection: tiny MXU matmul (K pads to 8) -- keeps the VALU free
    # for the LayerNorm epilogue.
    x = x + jnp.dot(g_ref[...].astype(jnp.float32), wg_ref[...],
                    preferred_element_type=jnp.float32)

    p = p_ref[...]
    x = x + p[0:1, :]                       # fused bias (bz + bg)

    # LayerNorm over d_model, single-pass statistics.
    mean = jnp.mean(x, axis=-1, keepdims=True)
    mean_sq = jnp.mean(x * x, axis=-1, keepdims=True)
    var = jnp.maximum(mean_sq - mean * mean, 0.0)
    xn = (x - mean) * jax.lax.rsqrt(var + LN_EPS)
    o_ref[...] = (xn * p[1:2, :] + p[2:3, :]).astype(o_ref.dtype)


def prepare_token_embedder_params(wz, bz, wg, bg, gamma, beta, *,
                                  compute_dtype=jnp.bfloat16):
    """One-time parameter layout prep (hoisted out of the per-call path).

    wz: [d_model, 512], wg: [d_model, 4] in PyTorch nn.Linear layout.
    compute_dtype controls the Wz matmul dtype (accumulation stays f32);
    pass jnp.float32 to disable the bf16 fast path.
    """
    d_model = wz.shape[0]
    packed = jnp.zeros((8, d_model), jnp.float32)          # sublane-padded
    packed = packed.at[0].set(jnp.asarray(bz, jnp.float32)
                              + jnp.asarray(bg, jnp.float32))
    packed = packed.at[1].set(jnp.asarray(gamma, jnp.float32))
    packed = packed.at[2].set(jnp.asarray(beta, jnp.float32))
    return dict(
        wz_t=jnp.asarray(wz, jnp.float32).T.astype(compute_dtype),  # (512, d)
        wg_t=jnp.asarray(wg, jnp.float32).T,                        # (4, d)
        ln_b=packed,                                                 # (8, d)
    )


def _pick_tile(B, *, tb_max=1024, min_steps=2):
    """Batch tile: multiple of 8, <= tb_max, targeting >= min_steps grid steps
    (so the 'parallel' axis can shard across v7x's two TensorCores)."""
    if B <= 8:
        return 8
    n_steps = max(min_steps, pl.cdiv(B, tb_max))
    tb = ((pl.cdiv(B, n_steps) + 7) // 8) * 8
    return max(8, min(tb, tb_max))


def token_embedder(z, g, params, *, tb=None, out_dtype=None):
    """z: [B, 512], g: [B, 4]; params from prepare_token_embedder_params."""
    B = z.shape[0]
    z_dim, d_model = params["wz_t"].shape
    g_dim = params["wg_t"].shape[0]
    out_dtype = z.dtype if out_dtype is None else out_dtype

    if tb is None:
        tb = _pick_tile(B)
    else:
        tb = max(8, ((min(tb, max(B, 8)) + 7) // 8) * 8)
    n_blocks = pl.cdiv(B, tb)        # ragged last block: Pallas masks writes

    wz_item = params["wz_t"].dtype.itemsize
    out_item = jnp.dtype(out_dtype).itemsize
    flops = 2 * B * (z_dim + g_dim) * d_model + 10 * B * d_model
    bytes_accessed = (B * z_dim * z.dtype.itemsize
                      + B * g_dim * g.dtype.itemsize
                      + B * d_model * out_item
                      + z_dim * d_model * wz_item
                      + (g_dim + 8) * d_model * 4)
    cost = pl.CostEstimate(flops=int(flops), transcendentals=int(B),
                           bytes_accessed=int(bytes_accessed))

    return pl.pallas_call(
        token_embedder_kernel,
        out_shape=jax.ShapeDtypeStruct((B, d_model), out_dtype),
        grid_spec=pltpu.PrefetchScalarGridSpec(
            num_scalar_prefetch=0,
            grid=(n_blocks,),
            in_specs=[
                pl.BlockSpec((tb, z_dim), lambda i: (i, 0)),
                pl.BlockSpec((tb, g_dim), lambda i: (i, 0)),
                # Constant block index: fetched once, reused across the grid.
                pl.BlockSpec((z_dim, d_model), lambda i: (0, 0)),
                pl.BlockSpec((g_dim, d_model), lambda i: (0, 0)),
                pl.BlockSpec((8, d_model), lambda i: (0, 0)),
            ],
            out_specs=pl.BlockSpec((tb, d_model), lambda i: (i, 0)),
        ),
        compiler_params=pltpu.CompilerParams(
            dimension_semantics=("parallel",)),
        cost_estimate=cost,
    )(z, g, params["wz_t"], params["wg_t"], params["ln_b"])


def token_embedder_ref(z, g, wz, bz, wg, bg, gamma, beta, *,
                       compute_dtype=jnp.float32):
    z_emb = jnp.dot(z.astype(compute_dtype), wz.T.astype(compute_dtype),
                    preferred_element_type=jnp.float32) + bz
    g_emb = jnp.dot(g, wg.T, preferred_element_type=jnp.float32) + bg
    x = z_emb + g_emb
    mean = jnp.mean(x, axis=-1, keepdims=True)
    var = jnp.mean((x - mean) ** 2, axis=-1, keepdims=True)
    xn = (x - mean) / jnp.sqrt(var + LN_EPS)
    return xn * gamma + beta


if __name__ == "__main__":
    key = jax.random.PRNGKey(0)
    k_z, k_g, k_wz, k_bz, k_wg, k_bg, k_ga, k_be = jax.random.split(key, 8)

    # Ragged batch on purpose: exercises the masked last block and gives a
    # 2-step grid (adaptive tile -> tb=56, so the "parallel" axis can shard
    # across v7x's two TensorCores).
    B = 100
    z = jax.random.normal(k_z, (B, Z_DIM), dtype=jnp.float32)
    g = jax.random.normal(k_g, (B, G_DIM), dtype=jnp.float32)

    # Deterministic parameter init (PyTorch nn.Linear-style uniform bounds).
    wz = jax.random.uniform(k_wz, (D_MODEL, Z_DIM), jnp.float32,
                            -1.0 / Z_DIM ** 0.5, 1.0 / Z_DIM ** 0.5)
    bz = jax.random.uniform(k_bz, (D_MODEL,), jnp.float32,
                            -1.0 / Z_DIM ** 0.5, 1.0 / Z_DIM ** 0.5)
    wg = jax.random.uniform(k_wg, (D_MODEL, G_DIM), jnp.float32,
                            -1.0 / G_DIM ** 0.5, 1.0 / G_DIM ** 0.5)
    bg = jax.random.uniform(k_bg, (D_MODEL,), jnp.float32,
                            -1.0 / G_DIM ** 0.5, 1.0 / G_DIM ** 0.5)
    gamma = 1.0 + 0.1 * jax.random.normal(k_ga, (D_MODEL,), jnp.float32)
    beta = 0.05 * jax.random.normal(k_be, (D_MODEL,), jnp.float32)

    # One-time param prep (transpose, bf16 cast, bias fusion, LN packing).
    params = prepare_token_embedder_params(wz, bz, wg, bg, gamma, beta)

    out = jax.block_until_ready(token_embedder(z, g, params))
    assert out.shape == (B, D_MODEL) and out.dtype == jnp.float32

    # Tight check vs a reference using the same (bf16) matmul dtype.
    ref_bf16 = token_embedder_ref(z, g, wz, bz, wg, bg, gamma, beta,
                                  compute_dtype=jnp.bfloat16)
    assert jnp.allclose(out, ref_bf16, atol=2e-3, rtol=2e-3), \
        "mismatch vs dtype-matched reference"

    # Loose sanity check vs the full-f32 reference (bf16 rounding only).
    ref_f32 = token_embedder_ref(z, g, wz, bz, wg, bg, gamma, beta)
    assert jnp.allclose(out, ref_f32, atol=5e-2, rtol=5e-2), \
        "mismatch vs f32 reference"

    # Single ragged block with masked tail rows (B < tile).
    out_small = jax.block_until_ready(token_embedder(z[:5], g[:5], params))
    assert jnp.allclose(out_small, ref_bf16[:5], atol=2e-3, rtol=2e-3), \
        "mismatch on small ragged batch"

    print("KERNEL_OK")
</pallas_src>

<mosaic_0001>
module attributes {stable_mosaic.version = 11 : i64} {
  func.func @token_embedder_kernel(%arg0: i32, %arg1: memref<56x512xf32, #tpu.memory_space<vmem>>, %arg2: memref<56x4xf32, #tpu.memory_space<vmem>>, %arg3: memref<512x384xbf16, #tpu.memory_space<vmem>>, %arg4: memref<4x384xf32, #tpu.memory_space<vmem>>, %arg5: memref<8x384xf32, #tpu.memory_space<vmem>>, %arg6: memref<56x384xf32, #tpu.memory_space<vmem>>) attributes {dimension_semantics = [#tpu.dimension_semantics<parallel>], iteration_bounds = array<i64: 2>, scalar_prefetch = 0 : i64, scratch_operands = 0 : i64, tpu.core_type = #tpu.core_type<tc>, window_params = [{transform_indices = @transform_0, window_bounds = array<i64: 56, 512>}, {transform_indices = @transform_1, window_bounds = array<i64: 56, 4>}, {pipeline_mode = #tpu.pipeline_mode<synchronous>, transform_indices = @transform_2, window_bounds = array<i64: 512, 384>}, {pipeline_mode = #tpu.pipeline_mode<synchronous>, transform_indices = @transform_3, window_bounds = array<i64: 4, 384>}, {pipeline_mode = #tpu.pipeline_mode<synchronous>, transform_indices = @transform_4, window_bounds = array<i64: 8, 384>}, {transform_indices = @transform_5, window_bounds = array<i64: 56, 384>}]} {
    %c0 = arith.constant 0 : index
    %c0_0 = arith.constant 0 : index
    %0 = vector.load %arg1[%c0, %c0_0] : memref<56x512xf32, #tpu.memory_space<vmem>>, vector<56x512xf32>
    %1 = arith.truncf %0 : vector<56x512xf32> to vector<56x512xbf16>
    %c0_1 = arith.constant 0 : index
    %c0_2 = arith.constant 0 : index
    %2 = vector.load %arg3[%c0_1, %c0_2] : memref<512x384xbf16, #tpu.memory_space<vmem>>, vector<512x384xbf16>
    %cst = arith.constant dense<0.000000e+00> : vector<56x384xf32>
    %3 = tpu.matmul %1, %2, %cst {dimension_numbers = #tpu.dot_dimension_numbers<[1], [0], [0], [1], [0, 0, 1, 1], [], []>} : vector<56x512xbf16>, vector<512x384xbf16>, vector<56x384xf32> -> vector<56x384xf32>
    %c0_3 = arith.constant 0 : index
    %c0_4 = arith.constant 0 : index
    %4 = vector.load %arg2[%c0_3, %c0_4] : memref<56x4xf32, #tpu.memory_space<vmem>>, vector<56x4xf32>
    %c0_5 = arith.constant 0 : index
    %c0_6 = arith.constant 0 : index
    %5 = vector.load %arg4[%c0_5, %c0_6] : memref<4x384xf32, #tpu.memory_space<vmem>>, vector<4x384xf32>
    %cst_7 = arith.constant dense<0.000000e+00> : vector<56x384xf32>
    %6 = tpu.matmul %4, %5, %cst_7 {dimension_numbers = #tpu.dot_dimension_numbers<[1], [0], [0], [1], [0, 0, 1, 1], [], []>} : vector<56x4xf32>, vector<4x384xf32>, vector<56x384xf32> -> vector<56x384xf32>
    %7 = arith.addf %3, %6 : vector<56x384xf32>
    %c0_8 = arith.constant 0 : index
    %c0_9 = arith.constant 0 : index
    %8 = vector.load %arg5[%c0_8, %c0_9] : memref<8x384xf32, #tpu.memory_space<vmem>>, vector<8x384xf32>
    %9 = vector.extract_strided_slice %8 {offsets = [0, 0], sizes = [1, 384], strides = [1, 1]} : vector<8x384xf32> to vector<1x384xf32>
    %10 = vector.broadcast %9 : vector<1x384xf32> to vector<56x384xf32>
    %11 = arith.addf %7, %10 : vector<56x384xf32>
    %cst_10 = arith.constant dense<0.000000e+00> : vector<56xf32>
    %12 = vector.multi_reduction <add>, %11, %cst_10 [1] : vector<56x384xf32> to vector<56xf32>
    %13 = vector.shape_cast %12 : vector<56xf32> to vector<56x1xf32>
    %cst_11 = arith.constant 3.840000e+02 : f32
    %14 = vector.broadcast %cst_11 : f32 to vector<56x1xf32>
    %15 = arith.divf %13, %14 : vector<56x1xf32>
    %16 = arith.mulf %11, %11 : vector<56x384xf32>
    %cst_12 = arith.constant dense<0.000000e+00> : vector<56xf32>
    %17 = vector.multi_reduction <add>, %16, %cst_12 [1] : vector<56x384xf32> to vector<56xf32>
    %18 = vector.shape_cast %17 : vector<56xf32> to vector<56x1xf32>
    %cst_13 = arith.constant 3.840000e+02 : f32
    %19 = vector.broadcast %cst_13 : f32 to vector<56x1xf32>
    %20 = arith.divf %18, %19 : vector<56x1xf32>
    %21 = arith.mulf %15, %15 : vector<56x1xf32>
    %22 = arith.subf %20, %21 : vector<56x1xf32>
    %cst_14 = arith.constant 0.000000e+00 : f32
    %23 = vector.broadcast %cst_14 : f32 to vector<56x1xf32>
    %24 = arith.maximumf %22, %23 : vector<56x1xf32>
    %25 = vector.broadcast %15 : vector<56x1xf32> to vector<56x384xf32>
    %26 = arith.subf %11, %25 : vector<56x384xf32>
    %cst_15 = arith.constant 9.99999974E-6 : f32
    %27 = vector.broadcast %cst_15 : f32 to vector<56x1xf32>
    %28 = arith.addf %24, %27 : vector<56x1xf32>
    %29 = math.rsqrt %28 : vector<56x1xf32>
    %30 = vector.broadcast %29 : vector<56x1xf32> to vector<56x384xf32>
    %31 = arith.mulf %26, %30 : vector<56x384xf32>
    %32 = vector.extract_strided_slice %8 {offsets = [1, 0], sizes = [1, 384], strides = [1, 1]} : vector<8x384xf32> to vector<1x384xf32>
    %33 = vector.broadcast %32 : vector<1x384xf32> to vector<56x384xf32>
    %34 = arith.mulf %31, %33 : vector<56x384xf32>
    %35 = vector.extract_strided_slice %8 {offsets = [2, 0], sizes = [1, 384], strides = [1, 1]} : vector<8x384xf32> to vector<1x384xf32>
    %36 = vector.broadcast %35 : vector<1x384xf32> to vector<56x384xf32>
    %37 = arith.addf %34, %36 : vector<56x384xf32>
    %c0_16 = arith.constant 0 : index
    %c0_17 = arith.constant 0 : index
    %38 = vector.load %arg6[%c0_16, %c0_17] : memref<56x384xf32, #tpu.memory_space<vmem>>, vector<56x384xf32>
    tpu.vector_store %arg6[%c0_16, %c0_17], %37 {strides = array<i32>} : memref<56x384xf32, #tpu.memory_space<vmem>>, vector<56x384xf32>,
    return
  }
  func.func @transform_0(%arg0: i32) -> (i32, i32) {
    %c0_i32 = arith.constant 0 : i32
    %c0_i32_0 = arith.constant 0 : i32
    return %arg0, %c0_i32 : i32, i32
  }
  func.func @transform_1(%arg0: i32) -> (i32, i32) {
    %c0_i32 = arith.constant 0 : i32
    %c0_i32_0 = arith.constant 0 : i32
    return %arg0, %c0_i32 : i32, i32
  }
  func.func @transform_2(%arg0: i32) -> (i32, i32) {
    %c0_i32 = arith.constant 0 : i32
    %c0_i32_0 = arith.constant 0 : i32
    %c0_i32_1 = arith.constant 0 : i32
    return %c0_i32, %c0_i32_0 : i32, i32
  }
  func.func @transform_3(%arg0: i32) -> (i32, i32) {
    %c0_i32 = arith.constant 0 : i32
    %c0_i32_0 = arith.constant 0 : i32
    %c0_i32_1 = arith.constant 0 : i32
    return %c0_i32, %c0_i32_0 : i32, i32
  }
  func.func @transform_4(%arg0: i32) -> (i32, i32) {
    %c0_i32 = arith.constant 0 : i32
    %c0_i32_0 = arith.constant 0 : i32
    %c0_i32_1 = arith.constant 0 : i32
    return %c0_i32, %c0_i32_0 : i32, i32
  }
  func.func @transform_5(%arg0: i32) -> (i32, i32) {
    %c0_i32 = arith.constant 0 : i32
    %c0_i32_0 = arith.constant 0 : i32
    return %arg0, %c0_i32 : i32, i32
  }
}

</mosaic_0001>

<bundles_post_ra>
// kernel: tpu_custom_call.1
= control target key start
LH: loop header
LB: loop body
LE: loop exit
PB: predicated region body
PF: predicated region fallthrough
CT: control target
= control target key end

     0   :  { %10 = vsyncpa [#allocation3], 0  ;;  %s3255_s0 = inlined_call_operand.hbm [shape: f32[100,512], index: 0, kind: input, shape index: {}]   ;;  %s3256_s1 = inlined_call_operand.vmem [shape: f32[100,4], index: 1, kind: input, shape index: {}]   ;;  %s3257_s2 = inlined_call_operand.hbm [shape: bf16[512,384], index: 2, kind: input, shape index: {}]   ;;  %s3258_s3 = inlined_call_operand.vmem [shape: f32[4,384], index: 3, kind: input, shape index: {}]   ;;  %s3259_s4 = inlined_call_operand.vmem [shape: f32[8,384], index: 4, kind: input, shape index: {}]   ;;  %s3260_s5 = inlined_call_operand.hbm [shape: f32[100,384], index: 5, kind: output, shape index: {}]  }
   0x1   :  { %12 = vsyncpa [#allocation3 + $0x1], 0 }
   0x2   :  { %13 = vsyncpa [#allocation6], 0 }
   0x3   :  { %14 = vsyncpa [#allocation4], 0 }
   0x4   :  { %16 = vsyncpa [#allocation4 + $0x1], 0  ;;  %s2556_s18 = smov 0   ;;  %s2558_s19 = smov 0  }
   0x5   :  { %s2560_s20 = smov 0   ;;  %s2562_s21 = smov 0  }
   0x6 LB: > { %s2577_s22 = sadd.s32 4294967295, %s2513_s21   ;;  %s1932_s23 = sadd.s32 4294967294, %s2513_s21   ;;  %s2513_s21 = sphi %s2562_s21, %s3280_s21   ;;  %s2509_s20 = sphi %s2560_s20, %s3279_s20   ;;  %s2505_s19 = sphi %s2558_s19, %s3278_s19   ;;  %s2501_s18 = sphi %s2556_s18, %s3277_s18  }
   0x7   : > { %s2581_s24 = sadd.s32 1, %s2513_s21   ;;  %s29_s25 = sadd.s32 1, %s2509_s20 }
   0x8   : > { %s26_s26 = ssub.s32 %s2513_s21, %s2581_s24  ;;  %p36_p0 = scmp.ne.s32.totalorder %s2509_s20, %s2505_s19 }
   0x9   : > { %p27_p1 = scmp.eq.s32.totalorder %s26_s26, 0  ;;  %p37_p2 = scmp.eq.s32.totalorder %s2513_s21, 0 }
   0xa   : > { %p42_p3 = scmp.ne.s32.totalorder %s2505_s19, %s2501_s18  ;;  %p3261_p4 = scmp.eq.s32.totalorder %s2577_s22, 0 }
   0xb   : > { %s2593_s27 = scalar_select %p27_p1, %s2509_s20, %s29_s25  }
   0xc   : > { %p2595_p5 = por %p37_p2, %p36_p0  ;;  %p2601_p6 = por %p3261_p4, %p42_p3 }
   0xd   : > { %p155_p7 = scmp.eq.s32.totalorder %s2577_s22, 1  ;;  %p161_p8 = scmp.eq.s32.totalorder %s1932_s23, 1 }
   0xe   : > { %s3264_s28 = scalar_select %p2595_p5, 1, 0 }
   0xf   : > { %s3265_s29 = scalar_select %p2601_p6, 1, 0 }
  0x10   : > { %p1933_p9 = scmp.ge.s32.totalorder %s2513_s21, 1  ;;  %p168_p10 = scmp.lt.s32.totalorder %s2513_s21, 3 }
  0x11   : > { %p2608_p11 = por %p155_p7, %p36_p0  ;;  %p2612_p12 = por %p161_p8, %p42_p3 }
  0x12   : > { %p2616_p13 = pnand %p1933_p9, %p168_p10  ;;  %s2515_s8 = smov [#allocation5]  }
  0x13   : > { %s3266_s30 = scalar_select %p2608_p11, 1, 0 }
  0x14   : > { %s3267_s6 = scalar_select %p2612_p12, 1, 0 }
  0x15   : > { %s3268_s7 = scalar_select %p2616_p13, 1, 0 }
  0x16   : > { %p2191_p1 = pneg %p2616_p13  ;;  %s180_s9 = sshll.u32 %s2515_s8, 4  ;;  %s181_s9 = int_to_ptr.vmem [resolvable:$true] %s180_s9 }
  0x17   : > { %s2387_s13 = scalar_lea.hbm %s3257_s2, 12288 }
  0x18   : > { %p2624_p2 = pnand %p2191_p1, %p3261_p4  ;;  %p2388_p0 = scmp.ne.s32.totalorder %s3257_s2, %s2387_s13 }
  0x19   : > { %p2394_p9 = scmp.lt.u32.totalorder %s2387_s13, %s3257_s2 }
  0x1a   : > { %p2389_p3 = pneg %p2624_p2 }
  0x1c   : > { %p2390_p7 = pnand %p2389_p3, %p2388_p0 }
  0x1e   : > { %p2391_p8 = pneg %p2390_p7 }
  0x20   : > { %p2396_p10 = pnand %p2394_p9, %p2391_p8 }
  0x22   : > { %2399 = shalt.err (!%p2396_p10)
}
  0x23   : > { %s2400_s23 = scalar_lea.vmem %s181_s9, 12288  ;;  %p2408_p11 = scmp.lt.s32.totalorder %s181_s9, %s181_s9 }
  0x24   : > { %p2401_p1 = scmp.ne.s32.totalorder %s181_s9, %s2400_s23  ;;  %p2409_p6 = scmp.lt.s32.totalorder %s2400_s23, %s2400_s23 }
  0x26   : > { %p2403_p4 = pnand %p2401_p1, %p2389_p3  ;;  %p2410_p13 = por %p2409_p6, %p2408_p11 }
  0x28   : > { %p2404_p12 = pneg %p2403_p4 }
  0x2a   : > { %p2411_p5 = pnand %p2410_p13, %p2404_p12 }
  0x2c   : > { %2414 = shalt.err (!%p2411_p5)
}
  0x2d   : > { %s2516_s25 = smov 192   ;;  %s2517_s26 = smov 12  }
  0x2e   : > { %2194 = dma.hbm_to_vmem [thread:$0]  (!%p2624_p2), %s3257_s2, 12288, %s181_s9, [#allocation6], %s2516_s25, %s2516_s25, %s2517_s26  }
  0x2f   : > { %p1935_p0 = scmp.ge.s32.totalorder %s2513_s21, 2 }
  0x30   : > { %p3270_p4 = scmp.ne.s32.totalorder (!%p1935_p0), %s3264_s28, 0 }
  0x31   : > { %196 = sbr.rel (%p1935_p0) target bundleno = 91 (0x5b), region = 28 }
  0x38   : > { %199 = sbr.rel (!%p3270_p4) target bundleno = 91 (0x5b), region = 32  ;;  %s200_s12 = sand.u32 (%p3270_p4), 1, %s2509_s20  }
  0x39   : > { %s205_s13 = smul.u32 (%p3270_p4), 7, %s2513_s21  ;;  %s2654_s16 = scalar_lea.sflag (%p3270_p4), [#allocation3], %s200_s12 }
  0x3a   : > { %s2181_s14 = smul.u32 (%p3270_p4), 224, %s200_s12 }
  0x3b   : > { %s206_s15 = ssub.s32 (%p3270_p4), 13, %s205_s13 }
  0x3c   : > { %p207_p5 = scmp.lt.s32.totalorder (%p3270_p4), %s206_s15, 7  ;;  %s204_s17 = scalar_lea.vmem (%p3270_p4), [#allocation2], %s2181_s14 }
  0x3f   : > { %s3282_s15 = smov (!%p207_p5, %s206_s15), 7 }
  0x40   : > { %s2651_s10 = sshll.u32 %s3282_s15, 9 }
  0x41   : > { %s212_s9 = ssub.s32 3584, %s2651_s10 }
  0x42   : > { %213 = vsyncadd %s2654_s16, %s212_s9  ;;  %p1938_p6 = scmp.ne.s32.totalorder %s2651_s10, 0  ;;  %s2069_s28 = smul.u32 3584, %s2513_s21 }
  0x43   : > { %s219_s23 = sshll.u32 %s204_s17, 4  ;;  %s2419_s14 = scalar_lea.hbm %s3255_s0, 6656  ;;  %s2664_s23 = int_to_ptr.vmem [resolvable:$true] %s219_s23 }
  0x44   : > { %s2662_s8 = scalar_lea.hbm %s3255_s0, %s2069_s28 }
  0x45   : > { %s2415_s11 = scalar_lea.hbm %s2662_s8, %s2651_s10  ;;  %p2420_p2 = scmp.lt.u32.totalorder %s2662_s8, %s3255_s0 }
  0x46   : > { %p2416_p11 = scmp.ne.s32.totalorder %s2662_s8, %s2415_s11  ;;  %p2421_p3 = scmp.lt.u32.totalorder %s2419_s14, %s2415_s11 }
  0x47   : > { %p2423_p8 = scmp.lt.u32.totalorder %s2415_s11, %s2662_s8 }
  0x48   : > { %p2417_p12 = pnand %p2416_p11, %p1938_p6  ;;  %p2422_p7 = por %p2421_p3, %p2420_p2 }
  0x4a   : > { %p2418_p13 = pneg %p2417_p12  ;;  %p2424_p9 = por %p2423_p8, %p2422_p7 }
  0x4c   : > { %p2425_p10 = pnand %p2424_p9, %p2418_p13 }
  0x4e   : > { %2428 = shalt.err (!%p2425_p10)
}
  0x4f   : > { %s2429_s17 = scalar_lea.vmem %s2664_s23, %s2651_s10  ;;  %s2518_s28 = smov [#allocation2]  }
  0x50   : > { %p2430_p1 = scmp.ne.s32.totalorder %s2664_s23, %s2429_s17  ;;  %s2433_s25 = sshll.u32 %s2518_s28, 4  ;;  %s2434_s25 = int_to_ptr.vmem [resolvable:$false] %s2433_s25 }
  0x51   : > { %s2435_s26 = scalar_lea.vmem %s2434_s25, 7168  ;;  %p2436_p11 = scmp.lt.s32.totalorder %s2664_s23, %s2434_s25 }
  0x52   : > { %p2431_p4 = pnand %p2430_p1, %p1938_p6  ;;  %p2437_p12 = scmp.lt.s32.totalorder %s2435_s26, %s2429_s17 }
  0x54   : > { %p2432_p5 = pneg %p2431_p4  ;;  %p2438_p2 = por %p2437_p12, %p2436_p11 }
  0x56   : > { %p2439_p3 = pnand %p2438_p2, %p2432_p5 }
  0x58   : > { %2442 = shalt.err (!%p2439_p3)
}
  0x59   : > { %s2519_s11 = smov 512   ;;  %s2520_s12 = smov 32  }
  0x5a   : > { %225 = dma.hbm_to_vmem [thread:$0]  (%p1938_p6), %s2662_s8, %s2651_s10, %s2664_s23, %s2654_s16, %s2519_s11, %s2519_s11, %s2520_s12  }
  0x5b PF: > { %p3271_p13 = scmp.ne.s32.totalorder %s3268_s7, 0 }
  0x5c   : > { %s2694_s13 = sand.u32 (!%p3271_p13), 1, %s2505_s19   ;;  %p3272_p7 = scmp.ne.s32.totalorder (!%p3271_p13), %s3265_s29, 0 }
  0x5d   : > { %248 = sbr.rel (%p3271_p13) target bundleno = 660 (0x294), region = 40  ;;  %s251_s15 = scalar_lea.sflag (!%p3271_p13), [#allocation3], %s2694_s13 }
  0x5e   : > { %s2182_s14 = smul.u32 (!%p3271_p13), 224, %s2694_s13 }
  0x60   : > { %s2698_s9 = scalar_lea.vmem (!%p3271_p13), [#allocation2], %s2182_s14 }
  0x64   : > { %2488 = dma.done.wait (%p3272_p7), %s251_s15, 3584  }
  0x65   : > { %2490 = vsyncadd (%p3272_p7), %s251_s15, 4294963712  ;;  %p3273_p6 = scmp.eq.s32.totalorder %s2577_s22, 0 }
  0x67   : > { %2492 = dma.done.wait (%p3273_p6), [#allocation6], 12288   ;;  %p3274_p8 = pmov %p3273_p6 }
  0x68   : > { %s2709_s7 = smul.u32 7, %s2577_s22  ;;  %v2521_v0 = vmov 0.0   ;;  %vm2522_vm0 = vmmov 0   ;;  %vm527_vm1 = vcmask 1043456   ;;  %vm505_vm2 = vcmask 31744   ;;  %v500_v1 = vld [vmem:[%s3258_s3] sm:$0xff] }
  0x69   : > { %2494 = vsyncadd (%p3274_p8), [#allocation6], 4294955008  ;;  %2158 = vmatprep.subr.mxu1 %v2521_v0  ;;  %598 = vmatprep.mubr.f32.mxu0 %v2521_v0  ;;  %v501_v2 = vld [vmem:[%s3258_s3 + $0x8] sm:$0xf]  ;;  %v504_v3 = vcombine.high %v500_v1, %v500_v1  ;;  %v2245_v5 = vld [vmem:[#allocation5] ss:$12 sps:$4 sm:$0xff]  }
  0x6a   : > { %p305_p9 = scmp.lt.s32.totalorder %s2709_s7, 12  ;;  %2160 = vmatprep.mubr.msk.f32.mxu1 %vm2522_vm0, %v2521_v0  ;;  %2159 = vmatpush3.msk.msra.mxu1 %vm527_vm1, %v501_v2  ;;  %v2247_v6 = vld [vmem:[#allocation5 + $0x4] ss:$12 sps:$4 sm:$0xff]   ;;  %v2248_v7 = vld [vmem:[#allocation5 + $0x180] ss:$12 sps:$4 sm:$0xff]   ;;  %v324_v60 = vld [vmem:[%s2698_s9 + $0x18] sm:$0xff] }
  0x6b   : > { %1946 = vmatprep.subr.msk.mxu0 %vm527_vm1, %v504_v3  ;;  %v2250_v8 = vld [vmem:[#allocation5 + $0x184] ss:$12 sps:$4 sm:$0xff]   ;;  %v2253_v9 = vld [vmem:[#allocation5 + $0x1c] ss:$12 sps:$4 sm:$0xff]   ;;  %v2259_v13 = vld [vmem:[#allocation5 + $0x34] ss:$12 sps:$4 sm:$0xff]  }
  0x6c   : > { %s306_s29 = scalar_select %p305_p9, %s2709_s7, 12  ;;  %1947 = vmatpush1.msk.msra.mxu0 %vm527_vm1, %v500_v1  ;;  %v2251_v10 = vld [vmem:[#allocation5 + $0x18] ss:$12 sps:$4 sm:$0xff]   ;;  %1324 = vmatprep.subr.bf16.mxu1 %v2250_v8  ;;  %v2256_v11 = vld [vmem:[#allocation5 + $0x19c] ss:$12 sps:$4 sm:$0xff]  }
  0x6d   : > { %1253 = vmatprep.subr.bf16.mxu0 %v2247_v6  ;;  %v2254_v12 = vld [vmem:[#allocation5 + $0x198] ss:$12 sps:$4 sm:$0xff]   ;;  %v2262_v14 = vld [vmem:[#allocation5 + $0x1b4] ss:$12 sps:$4 sm:$0xff]   ;;  %v2257_v15 = vld [vmem:[#allocation5 + $0x30] ss:$12 sps:$4 sm:$0xff]  }
  0x6e   : > { %s1945_s10 = sshll.u32 %s306_s29, 3  ;;  %v2260_v16 = vld [vmem:[#allocation5 + $0x1b0] ss:$12 sps:$4 sm:$0xff]   ;;  %v2265_v17 = vld [vmem:[#allocation5 + $0x4c] ss:$12 sps:$4 sm:$0xff]   ;;  %s1816_s23 = scalar_lea.sflag [#allocation4], %s2694_s13 }
  0x6f   : > { %s2726_s26 = scalar_lea.vmem %s3256_s1, %s1945_s10  ;;  %v2268_v18 = vld [vmem:[#allocation5 + $0x1cc] ss:$12 sps:$4 sm:$0xff]   ;;  %v2263_v19 = vld [vmem:[#allocation5 + $0x48] ss:$12 sps:$4 sm:$0xff]   ;;  %v2271_v21 = vld [vmem:[#allocation5 + $0x64] ss:$12 sps:$4 sm:$0xff]  }
  0x70   : > { %v493_v4 = vld [vmem:[%s2726_s26] sm:$0xff]  ;;  %v2266_v20 = vld [vmem:[#allocation5 + $0x1c8] ss:$12 sps:$4 sm:$0xff]   ;;  %v2281_v31 = vld [vmem:[#allocation5 + $0x90] ss:$12 sps:$4 sm:$0xff]   ;;  %s2183_s10 = smul.u32 168, %s2694_s13 }
  0x71   : > { %2161 = vmatmul.mubr.msk.f32.vlgmr.msra.gmra.mrb[0].mxu1 %vm505_vm2, %v493_v4  ;;  %1948 = vmatmul.mubr.msk.f32.vlgmr.msra.gmra.mrb[0].mxu0 %vm505_vm2, %v493_v4  ;;  %v2274_v22 = vld [vmem:[#allocation5 + $0x1e4] ss:$12 sps:$4 sm:$0xff]   ;;  %v2269_v23 = vld [vmem:[#allocation5 + $0x60] ss:$12 sps:$4 sm:$0xff]   ;;  %v2277_v25 = vld [vmem:[#allocation5 + $0x7c] ss:$12 sps:$4 sm:$0xff]  }
  0x72   : > { %2163 = vmatprep.mubr.msk.f32.mxu1 %vm2522_vm0, %v2521_v0  ;;  %1254 = vmatpush1.bf16.msra.mxu0 %v2245_v5  ;;  %v2272_v24 = vld [vmem:[#allocation5 + $0x1e0] ss:$12 sps:$4 sm:$0xff]   ;;  %v2280_v26 = vld [vmem:[#allocation5 + $0x1fc] ss:$12 sps:$4 sm:$0xff]   ;;  %v2275_v27 = vld [vmem:[#allocation5 + $0x78] ss:$12 sps:$4 sm:$0xff]  }
  0x73   : > { %1325 = vmatpush1.bf16.msra.mxu1 %v2248_v7  ;;  %1255 = vmatprep.subr.bf16.mxu0 %v2253_v9  ;;  %v2278_v28 = vld [vmem:[#allocation5 + $0x1f8] ss:$12 sps:$4 sm:$0xff]   ;;  %v2283_v29 = vld [vmem:[#allocation5 + $0x94] ss:$12 sps:$4 sm:$0xff]   ;;  %v2284_v32 = vld [vmem:[#allocation5 + $0x210] ss:$12 sps:$4 sm:$0xff]  }
  0x74   : > { %1326 = vmatprep.subr.bf16.mxu1 %v2256_v11  ;;  %604 = vmatprep.mubr.f32.mxu0 %v2521_v0  ;;  %v2286_v30 = vld [vmem:[#allocation5 + $0x214] ss:$12 sps:$4 sm:$0xff]   ;;  %v2289_v33 = vld [vmem:[#allocation5 + $0xac] ss:$12 sps:$4 sm:$0xff]   ;;  %v2295_v39 = vld [vmem:[#allocation5 + $0xc4] ss:$12 sps:$4 sm:$0xff]  }
  0x75   : > { %v494_v34 = vld [vmem:[%s2726_s26 + $0x8] sm:$0xff]  ;;  %v495_v38 = vld [vmem:[%s2726_s26 + $0x10] sm:$0xff]  ;;  %v496_v42 = vld [vmem:[%s2726_s26 + $0x18] sm:$0xff]  ;;  %s3099_s16 = scalar_lea.vmem [#allocation7], %s2183_s10  ;;  %p3275_p10 = scmp.ne.s32.totalorder %s3266_s30, 0 }
  0x76   : > { %1256 = vmatpush1.bf16.msra.mxu0 %v2251_v10  ;;  %v2292_v35 = vld [vmem:[#allocation5 + $0x22c] ss:$12 sps:$4 sm:$0xff]   ;;  %2164 = vmatmul.mubr.msk.f32.gmra.mrb[2].mxu1 %vm505_vm2, %v494_v34  ;;  %v2287_v36 = vld [vmem:[#allocation5 + $0xa8] ss:$12 sps:$4 sm:$0xff]   ;;  %v2298_v40 = vld [vmem:[#allocation5 + $0x244] ss:$12 sps:$4 sm:$0xff]  }
  0x77   : > { %1327 = vmatpush1.bf16.msra.mxu1 %v2254_v12  ;;  %1257 = vmatprep.subr.bf16.mxu0 %v2259_v13  ;;  %v2290_v37 = vld [vmem:[#allocation5 + $0x228] ss:$12 sps:$4 sm:$0xff]   ;;  %v2293_v41 = vld [vmem:[#allocation5 + $0xc0] ss:$12 sps:$4 sm:$0xff]   ;;  %v2299_v47 = vld [vmem:[#allocation5 + $0xd8] ss:$12 sps:$4 sm:$0xff]  }
  0x78   : > { %1328 = vmatprep.subr.bf16.mxu1 %v2262_v14  ;;  %1949 = vmatmul.mubr.msk.f32.gmra.mrb[2].mxu0 %vm505_vm2, %v494_v34  ;;  %v2296_v43 = vld [vmem:[#allocation5 + $0x240] ss:$12 sps:$4 sm:$0xff]   ;;  %v2301_v44 = vld [vmem:[#allocation5 + $0xdc] ss:$12 sps:$4 sm:$0xff]   ;;  %v2302_v48 = vld [vmem:[#allocation5 + $0x258] ss:$12 sps:$4 sm:$0xff]  }
  0x79   : > { %610 = vmatprep.mubr.f32.mxu0 %v2521_v0  ;;  %2166 = vmatprep.mubr.msk.f32.mxu1 %vm2522_vm0, %v2521_v0  ;;  %v2304_v45 = vld [vmem:[#allocation5 + $0x25c] ss:$12 sps:$4 sm:$0xff]   ;;  %v497_v46 = vld [vmem:[%s2726_s26 + $0x20] sm:$0xff]  ;;  %v2313_v54 = vld [vmem:[#allocation5 + $0x10c] ss:$12 sps:$4 sm:$0xff]   ;;  %s1824_s8 = ssub.s32 (%p3275_p10), 13, %s2709_s7 }
  0x7a   : > { %1258 = vmatpush1.bf16.msra.mxu0 %v2257_v15  ;;  %2167 = vmatmul.mubr.msk.f32.gmra.mrb[4].mxu1 %vm505_vm2, %v495_v38  ;;  %v2307_v49 = vld [vmem:[#allocation5 + $0xf4] ss:$12 sps:$4 sm:$0xff]   ;;  %v498_v51 = vld [vmem:[%s2726_s26 + $0x28] sm:$0xff]  ;;  %v2305_v52 = vld [vmem:[#allocation5 + $0xf0] ss:$12 sps:$4 sm:$0xff]   ;;  %p1825_p1 = scmp.lt.s32.totalorder (%p3275_p10), %s1824_s8, 7 }
  0x7b   : > { %1329 = vmatpush1.bf16.msra.mxu1 %v2260_v16  ;;  %1259 = vmatprep.subr.bf16.mxu0 %v2265_v17  ;;  %v2310_v50 = vld [vmem:[#allocation5 + $0x274] ss:$12 sps:$4 sm:$0xff]   ;;  %v2308_v53 = vld [vmem:[#allocation5 + $0x270] ss:$12 sps:$4 sm:$0xff]   ;;  %v2316_v55 = vld [vmem:[#allocation5 + $0x28c] ss:$12 sps:$4 sm:$0xff]  }
  0x7c   : > { %1330 = vmatprep.subr.bf16.mxu1 %v2268_v18  ;;  %1950 = vmatmul.mubr.msk.f32.gmra.mrb[4].mxu0 %vm505_vm2, %v495_v38  ;;  %v2311_v56 = vld [vmem:[#allocation5 + $0x108] ss:$12 sps:$4 sm:$0xff]   ;;  %v328_v61 = vld [vmem:[%s2698_s9 + $0x38] sm:$0xff]  ;;  %v2319_v63 = vld [vmem:[#allocation5 + $0x124] ss:$12 sps:$4 sm:$0xff]  }
  0x7d   : > { %616 = vmatprep.mubr.f32.mxu0 %v2521_v0  ;;  %2169 = vmatprep.mubr.msk.f32.mxu1 %vm2522_vm0, %v2521_v0  ;;  %v499_v57 = vld [vmem:[%s2726_s26 + $0x30] sm:$0xff]  ;;  %v322_v58 = vld [vmem:[%s2698_s9 + $0x8] sm:$0xff]  ;;  %v2774_v2 = vpack.c.bf16 %v328_v61, %v324_v60  ;;  %v2323_v7 = vld [vmem:[#allocation5 + $0x138] ss:$12 sps:$4 sm:$0xff]  }
  0x7e   : > { %1260 = vmatpush1.bf16.msra.mxu0 %v2263_v19  ;;  %2170 = vmatmul.mubr.msk.f32.gmra.mrb[6].mxu1 %vm505_vm2, %v496_v42  ;;  %v326_v59 = vld [vmem:[%s2698_s9 + $0x28] sm:$0xff]  ;;  %v2322_v3 = vld [vmem:[#allocation5 + $0x2a4] ss:$12 sps:$4 sm:$0xff]   ;;  %v2331_v9 = vld [vmem:[#allocation5 + $0x154] ss:$12 sps:$4 sm:$0xff]  }
  0x7f   : > { %1331 = vmatpush1.bf16.msra.mxu1 %v2266_v20  ;;  %1261 = vmatprep.subr.bf16.mxu0 %v2271_v21  ;;  %v2314_v62 = vld [vmem:[#allocation5 + $0x288] ss:$12 sps:$4 sm:$0xff]   ;;  %v2772_v1 = vpack.c.bf16 %v326_v59, %v322_v58  ;;  %v2317_v4 = vld [vmem:[#allocation5 + $0x120] ss:$12 sps:$4 sm:$0xff]   ;;  %v2326_v8 = vld [vmem:[#allocation5 + $0x2b8] ss:$12 sps:$4 sm:$0xff]  }
  0x80   : > { %1332 = vmatprep.subr.bf16.mxu1 %v2274_v22  ;;  %1951 = vmatmul.mubr.msk.f32.gmra.mrb[6].mxu0 %vm505_vm2, %v496_v42  ;;  %v2325_v5 = vld [vmem:[#allocation5 + $0x13c] ss:$12 sps:$4 sm:$0xff]   ;;  %v2334_v10 = vld [vmem:[#allocation5 + $0x2d4] ss:$12 sps:$4 sm:$0xff]   ;;  %v2337_v13 = vld [vmem:[#allocation5 + $0x16c] ss:$12 sps:$4 sm:$0xff]  }
  0x81   : > { %622 = vmatprep.mubr.f32.mxu0 %v2521_v0  ;;  %2172 = vmatprep.mubr.msk.f32.mxu1 %vm2522_vm0, %v2521_v0  ;;  %v2328_v6 = vld [vmem:[#allocation5 + $0x2bc] ss:$12 sps:$4 sm:$0xff]   ;;  %v2340_v14 = vld [vmem:[#allocation5 + $0x2ec] ss:$12 sps:$4 sm:$0xff]   ;;  %v321_v16 = vld [vmem:[%s2698_s9] sm:$0xff] }
  0x82   : > { %1262 = vmatpush1.bf16.msra.mxu0 %v2269_v23  ;;  %2173 = vmatmul.mubr.msk.f32.gmra.mrb[8].mxu1 %vm505_vm2, %v497_v46  ;;  %v2329_v11 = vld [vmem:[#allocation5 + $0x150] ss:$12 sps:$4 sm:$0xff]   ;;  %v2335_v15 = vld [vmem:[#allocation5 + $0x168] ss:$12 sps:$4 sm:$0xff]   ;;  %v325_v17 = vld [vmem:[%s2698_s9 + $0x20] sm:$0xff] }
  0x83   : > { %1333 = vmatpush1.bf16.msra.mxu1 %v2272_v24  ;;  %1263 = vmatprep.subr.bf16.mxu0 %v2277_v25  ;;  %v2332_v12 = vld [vmem:[#allocation5 + $0x2d0] ss:$12 sps:$4 sm:$0xff]   ;;  %v2338_v18 = vld [vmem:[#allocation5 + $0x2e8] ss:$12 sps:$4 sm:$0xff]   ;;  %v2350_v42 = vld [vmem:[#allocation5 + $0x278] ss:$12 sps:$4 sm:$0xff]  }
  0x84   : > { %1334 = vmatprep.subr.bf16.mxu1 %v2280_v26  ;;  %1952 = vmatmul.mubr.msk.f32.gmra.mrb[8].mxu0 %vm505_vm2, %v497_v46  ;;  %v323_v19 = vld [vmem:[%s2698_s9 + $0x10] sm:$0xff]  ;;  %v330_v23 = vld [vmem:[%s2698_s9 + $0x48] sm:$0xff]  ;;  %v2786_v26 = vpack.c.bf16 %v325_v17, %v321_v16  ;;  %v341_v58 = vld [vmem:[%s2698_s9 + $0xa0] sm:$0xff] }
  0x85   : > { %628 = vmatprep.mubr.f32.mxu0 %v2521_v0  ;;  %2175 = vmatprep.mubr.msk.f32.mxu1 %vm2522_vm0, %v2521_v0  ;;  %v327_v20 = vld [vmem:[%s2698_s9 + $0x30] sm:$0xff]  ;;  %v334_v25 = vld [vmem:[%s2698_s9 + $0x68] sm:$0xff]  ;;  %v2366_v16 = vld [vmem:[#allocation5 + $0x2d8] ss:$12 sps:$4 sm:$0xff]  }
  0x86   : > { %1264 = vmatpush1.bf16.msra.mxu0 %v2275_v27  ;;  %2176 = vmatmul.mubr.msk.f32.gmra.mrb[10].mxu1 %vm505_vm2, %v498_v51  ;;  %v2341_v21 = vld [vmem:[#allocation5 + $0xc8] ss:$12 sps:$4 sm:$0xff]   ;;  %v332_v27 = vld [vmem:[%s2698_s9 + $0x58] sm:$0xff]  ;;  %v2792_v34 = vpack.c.bf16 %v334_v25, %v330_v23 }
  0x87   : > { %1335 = vmatpush1.bf16.msra.mxu1 %v2278_v28  ;;  %1265 = vmatprep.subr.bf16.mxu0 %v2283_v29  ;;  %v2342_v22 = vld [vmem:[#allocation5 + $0x248] ss:$12 sps:$4 sm:$0xff]   ;;  %v2789_v28 = vpack.c.bf16 %v327_v20, %v323_v19  ;;  %v336_v29 = vld [vmem:[%s2698_s9 + $0x78] sm:$0xff] }
  0x88   : > { %1336 = vmatprep.subr.bf16.mxu1 %v2286_v30  ;;  %1953 = vmatmul.mubr.msk.f32.gmra.mrb[10].mxu0 %vm505_vm2, %v498_v51  ;;  %v2343_v24 = vld [vmem:[#allocation5 + $0x8] ss:$12 sps:$4 sm:$0xff]   ;;  %v2797_v38 = vpack.c.bf16 %v336_v29, %v332_v27  ;;  %v344_v51 = vld [vmem:[%s2698_s9 + $0xb8] sm:$0xff]  ;;  %v2845_v27 = vld [vmem:[%s3259_s4] sm:$0xff] }
  0x89   : > { %634 = vmatprep.mubr.f32.mxu0 %v2521_v0  ;;  %2178 = vmatprep.mubr.msk.f32.mxu1 %vm2522_vm0, %v2521_v0  ;;  %v2320_v0 = vld [vmem:[#allocation5 + $0x2a0] ss:$12 sps:$4 sm:$0xff]   ;;  %v2344_v30 = vld [vmem:[#allocation5 + $0x188] ss:$12 sps:$4 sm:$0xff]   ;;  %v2367_v19 = vld [vmem:[#allocation5 + $0x98] ss:$12 sps:$4 sm:$0xff]  }
  0x8a   : > { %1266 = vmatpush1.bf16.msra.mxu0 %v2281_v31  ;;  %2179 = vmatmul.mubr.msk.f32.gmra.mrb[12].mxu1 %vm505_vm2, %v499_v57  ;;  %v2345_v31 = vld [vmem:[#allocation5 + $0xe0] ss:$12 sps:$4 sm:$0xff]   ;;  %v339_v59 = vld [vmem:[%s2698_s9 + $0x90] sm:$0xff]  ;;  %v2368_v20 = vld [vmem:[#allocation5 + $0x218] ss:$12 sps:$4 sm:$0xff]  }
  0x8b   : > { %1337 = vmatpush1.bf16.msra.mxu1 %v2284_v32  ;;  %1267 = vmatprep.subr.bf16.mxu0 %v2289_v33  ;;  %v2346_v32 = vld [vmem:[#allocation5 + $0x260] ss:$12 sps:$4 sm:$0xff]   ;;  %v343_v60 = vld [vmem:[%s2698_s9 + $0xb0] sm:$0xff] }
  0x8c   : > { %1338 = vmatprep.subr.bf16.mxu1 %v2292_v35  ;;  %1954 = vmatmul.mubr.msk.f32.gmra.mrb[12].mxu0 %vm505_vm2, %v499_v57  ;;  %v2347_v33 = vld [vmem:[#allocation5 + $0x20] ss:$12 sps:$4 sm:$0xff]   ;;  %v2357_v61 = vld [vmem:[#allocation5 + $0x128] ss:$12 sps:$4 sm:$0xff]   ;;  %v2371_v23 = vld [vmem:[#allocation5 + $0xb0] ss:$12 sps:$4 sm:$0xff]  }
  0x8d   : > { %1285 = vmatprep.mubr.bf16.mxu0 %v2772_v1  ;;  %1356 = vmatprep.mubr.bf16.mxu1 %v2774_v2  ;;  %v329_v35 = vld [vmem:[%s2698_s9 + $0x40] sm:$0xff] }
  0x8e   : > { %1268 = vmatpush1.bf16.msra.mxu0 %v2287_v36  ;;  %v333_v36 = vld [vmem:[%s2698_s9 + $0x60] sm:$0xff] }
  0x8f   : > { %1339 = vmatpush1.bf16.msra.mxu1 %v2290_v37  ;;  %1269 = vmatprep.subr.bf16.mxu0 %v2295_v39  ;;  %v2348_v37 = vld [vmem:[#allocation5 + $0x1a0] ss:$12 sps:$4 sm:$0xff]   ;;  %v331_v39 = vld [vmem:[%s2698_s9 + $0x50] sm:$0xff]  ;;  %v2806_v46 = vpack.c.bf16 %v333_v36, %v329_v35 }
  0x90   : > { %1340 = vmatprep.subr.bf16.mxu1 %v2298_v40  ;;  %v335_v40 = vld [vmem:[%s2698_s9 + $0x70] sm:$0xff]  ;;  %v337_v57 = vld [vmem:[%s2698_s9 + $0x80] sm:$0xff] }
  0x92   : > { %1270 = vmatpush1.bf16.msra.mxu0 %v2293_v41  ;;  %v2349_v41 = vld [vmem:[#allocation5 + $0xf8] ss:$12 sps:$4 sm:$0xff]  }
  0x93   : > { %1341 = vmatpush1.bf16.msra.mxu1 %v2296_v43  ;;  %1271 = vmatprep.subr.bf16.mxu0 %v2301_v44  ;;  %v338_v43 = vld [vmem:[%s2698_s9 + $0x88] sm:$0xff]  ;;  %v2351_v44 = vld [vmem:[#allocation5 + $0x38] ss:$12 sps:$4 sm:$0xff]  }
  0x94   : > { %1342 = vmatprep.subr.bf16.mxu1 %v2304_v45  ;;  %v342_v45 = vld [vmem:[%s2698_s9 + $0xa8] sm:$0xff] }
  0x96   : > { %1272 = vmatpush1.bf16.msra.mxu0 %v2299_v47  ;;  %v2352_v47 = vld [vmem:[#allocation5 + $0x1b8] ss:$12 sps:$4 sm:$0xff]  }
  0x97   : > { %1343 = vmatpush1.bf16.msra.mxu1 %v2302_v48  ;;  %1273 = vmatprep.subr.bf16.mxu0 %v2307_v49  ;;  %v2353_v48 = vld [vmem:[#allocation5 + $0x110] ss:$12 sps:$4 sm:$0xff]  }
  0x98   : > { %1344 = vmatprep.subr.bf16.mxu1 %v2310_v50  ;;  %v340_v49 = vld [vmem:[%s2698_s9 + $0x98] sm:$0xff]  ;;  %v2809_v50 = vpack.c.bf16 %v335_v40, %v331_v39 }
  0x9a   : > { %1274 = vmatpush1.bf16.msra.mxu0 %v2305_v52  ;;  %v2354_v52 = vld [vmem:[#allocation5 + $0x290] ss:$12 sps:$4 sm:$0xff]  }
  0x9b   : > { %1345 = vmatpush1.bf16.msra.mxu1 %v2308_v53  ;;  %1275 = vmatprep.subr.bf16.mxu0 %v2313_v54  ;;  %v2355_v53 = vld [vmem:[#allocation5 + $0x50] ss:$12 sps:$4 sm:$0xff]   ;;  %v2812_v54 = vpack.c.bf16 %v342_v45, %v338_v43 }
  0x9c   : > { %1346 = vmatprep.subr.bf16.mxu1 %v2316_v55  ;;  %v2356_v55 = vld [vmem:[#allocation5 + $0x1d0] ss:$12 sps:$4 sm:$0xff]  }
  0x9e   : > { %1276 = vmatpush1.bf16.msra.mxu0 %v2311_v56  ;;  %v2815_v56 = vpack.c.bf16 %v344_v51, %v340_v49 }
  0x9f   : > { %1347 = vmatpush1.bf16.msra.mxu1 %v2314_v62  ;;  %1277 = vmatprep.subr.bf16.mxu0 %v2319_v63  ;;  %v2358_v62 = vld [vmem:[#allocation5 + $0x2a8] ss:$12 sps:$4 sm:$0xff]  }
  0xa0   : > { %1348 = vmatprep.subr.bf16.mxu1 %v2322_v3  ;;  %v2359_v63 = vld [vmem:[#allocation5 + $0x68] ss:$12 sps:$4 sm:$0xff]   ;;  %v357_v3 = vpack.c.bf16 %v341_v58, %v337_v57 }
  0xa2   : > { %1278 = vmatpush1.bf16.msra.mxu0 %v2317_v4  ;;  %v2360_v4 = vld [vmem:[#allocation5 + $0x1e8] ss:$12 sps:$4 sm:$0xff]  }
  0xa3   : > { %1349 = vmatpush1.bf16.msra.mxu1 %v2320_v0  ;;  %1279 = vmatprep.subr.bf16.mxu0 %v2325_v5  ;;  %v346_v0 = vld [vmem:[%s2698_s9 + $0xc8] sm:$0xff]  ;;  %v359_v5 = vpack.c.bf16 %v343_v60, %v339_v59 }
  0xa4   : > { %1350 = vmatprep.subr.bf16.mxu1 %v2328_v6  ;;  %v348_v6 = vld [vmem:[%s2698_s9 + $0xd8] sm:$0xff] }
  0xa6   : > { %1280 = vmatpush1.bf16.msra.mxu0 %v2323_v7  ;;  %v2361_v7 = vld [vmem:[#allocation5 + $0x140] ss:$12 sps:$4 sm:$0xff]  }
  0xa7   : > { %1351 = vmatpush1.bf16.msra.mxu1 %v2326_v8  ;;  %1281 = vmatprep.subr.bf16.mxu0 %v2331_v9  ;;  %v2362_v8 = vld [vmem:[#allocation5 + $0x2c0] ss:$12 sps:$4 sm:$0xff]   ;;  %v362_v9 = vpack.c.bf16 %v346_v0, %v346_v0 }
  0xa8   : > { %1352 = vmatprep.subr.bf16.mxu1 %v2334_v10  ;;  %v2363_v10 = vld [vmem:[#allocation5 + $0x80] ss:$12 sps:$4 sm:$0xff]  }
  0xaa   : > { %1282 = vmatpush1.bf16.msra.mxu0 %v2329_v11  ;;  %v364_v11 = vpack.c.bf16 %v348_v6, %v348_v6 }
  0xab   : > { %1353 = vmatpush1.bf16.msra.mxu1 %v2332_v12  ;;  %1283 = vmatprep.subr.bf16.mxu0 %v2337_v13  ;;  %v345_v12 = vld [vmem:[%s2698_s9 + $0xc0] sm:$0xff] }
  0xac   : > { %1354 = vmatprep.subr.bf16.mxu1 %v2340_v14  ;;  %v2364_v13 = vld [vmem:[#allocation5 + $0x200] ss:$12 sps:$4 sm:$0xff]   ;;  %v347_v14 = vld [vmem:[%s2698_s9 + $0xd0] sm:$0xff]  ;;  %v361_v17 = vpack.c.bf16 %v345_v12, %v345_v12 }
  0xae   : > { %1284 = vmatpush1.bf16.msra.mxu0 %v2335_v15  ;;  %v2365_v15 = vld [vmem:[#allocation5 + $0x158] ss:$12 sps:$4 sm:$0xff]  }
  0xaf   : > { %1355 = vmatpush1.bf16.msra.mxu1 %v2338_v18  ;;  %2078 = vmatprep.subr.bf16.mxu0 %v2341_v21  ;;  %v363_v18 = vpack.c.bf16 %v347_v14, %v347_v14  ;;  %v2369_v21 = vld [vmem:[#allocation5 + $0x170] ss:$12 sps:$4 sm:$0xff]  }
  0xb0   : > { %2118 = vmatprep.subr.bf16.mxu1 %v2342_v22  ;;  %v2370_v22 = vld [vmem:[#allocation5 + $0x2f0] ss:$12 sps:$4 sm:$0xff]  }
  0xb1   : > { %1286 = vmatmul.mubr.bf16.vlgmr.msra.gmra.mrb[16].mxu0 %v2786_v26 }
  0xb2   : > { %1357 = vmatmul.mubr.bf16.vlgmr.msra.gmra.mrb[16].mxu1 %v2789_v28  ;;  %2079 = vmatpush3.bf16.msra.mxu0 %v2343_v24  ;;  %v2372_v24 = vld [vmem:[#allocation5 + $0x230] ss:$12 sps:$4 sm:$0xff]  }
  0xb3   : > { %2119 = vmatpush3.bf16.msra.mxu1 %v2344_v30  ;;  %2080 = vmatprep.subr.bf16.mxu0 %v2345_v31 }
  0xb4   : > { %2120 = vmatprep.subr.bf16.mxu1 %v2346_v32  ;;  %1295 = vmatprep.mubr.bf16.mxu0 %v2792_v34 }
  0xb5   : > { %1366 = vmatprep.mubr.bf16.mxu1 %v2797_v38 }
  0xb6   : > { %2081 = vmatpush3.bf16.msra.mxu0 %v2347_v33  ;;  %v2867_v33 = vld [vmem:[%s3259_s4 + $0x10] sm:$0xff] }
  0xb7   : > { %2121 = vmatpush3.bf16.msra.mxu1 %v2348_v37  ;;  %2082 = vmatprep.subr.bf16.mxu0 %v2349_v41 }
  0xb8   : > { %2122 = vmatprep.subr.bf16.mxu1 %v2350_v42 }
  0xb9   : > { %1296 = vmatmul.mubr.bf16.gmra.mrb[20].mxu0 %v2806_v46 }
  0xba   : > { %1367 = vmatmul.mubr.bf16.gmra.mrb[20].mxu1 %v2809_v50  ;;  %2083 = vmatpush3.bf16.msra.mxu0 %v2351_v44 }
  0xbb   : > { %2123 = vmatpush3.bf16.msra.mxu1 %v2352_v47  ;;  %2084 = vmatprep.subr.bf16.mxu0 %v2353_v48 }
  0xbc   : > { %2124 = vmatprep.subr.bf16.mxu1 %v2354_v52  ;;  %1305 = vmatprep.mubr.bf16.mxu0 %v2812_v54 }
  0xbd   : > { %1376 = vmatprep.mubr.bf16.mxu1 %v2815_v56 }
  0xbe   : > { %2085 = vmatpush3.bf16.msra.mxu0 %v2355_v53 }
  0xbf   : > { %2125 = vmatpush3.bf16.msra.mxu1 %v2356_v55  ;;  %2086 = vmatprep.subr.bf16.mxu0 %v2357_v61 }
  0xc0   : > { %2126 = vmatprep.subr.bf16.mxu1 %v2358_v62 }
  0xc1   : > { %1306 = vmatmul.mubr.bf16.gmra.mrb[24].mxu0 %v357_v3 }
  0xc2   : > { %1377 = vmatmul.mubr.bf16.gmra.mrb[24].mxu1 %v359_v5  ;;  %2087 = vmatpush3.bf16.msra.mxu0 %v2359_v63 }
  0xc3   : > { %2127 = vmatpush3.bf16.msra.mxu1 %v2360_v4  ;;  %2088 = vmatprep.subr.bf16.mxu0 %v2361_v7 }
  0xc4   : > { %2128 = vmatprep.subr.bf16.mxu1 %v2362_v8  ;;  %1315 = vmatprep.mubr.bf16.mxu0 %v362_v9 }
  0xc5   : > { %1386 = vmatprep.mubr.bf16.mxu1 %v364_v11 }
  0xc6   : > { %2089 = vmatpush3.bf16.msra.mxu0 %v2363_v10 }
  0xc7   : > { %2129 = vmatpush3.bf16.msra.mxu1 %v2364_v13  ;;  %2090 = vmatprep.subr.bf16.mxu0 %v2365_v15 }
  0xc8   : > { %2130 = vmatprep.subr.bf16.mxu1 %v2366_v16 }
  0xc9   : > { %1316 = vmatmul.mubr.bf16.gmra.mrb[28].mxu0 %v361_v17 }
  0xca   : > { %1387 = vmatmul.mubr.bf16.gmra.mrb[28].mxu1 %v363_v18  ;;  %2091 = vmatpush3.bf16.msra.mxu0 %v2367_v19 }
  0xcb   : > { %2131 = vmatpush3.bf16.msra.mxu1 %v2368_v20  ;;  %2092 = vmatprep.subr.bf16.mxu0 %v2369_v21 }
  0xcc   : > { %2132 = vmatprep.subr.bf16.mxu1 %v2370_v22  ;;  %1427 = vmatprep.mubr.bf16.mxu0 %v2772_v1  ;;  %v1526_v1 = vlaneseq }
  0xcd   : > { %1491 = vmatprep.mubr.bf16.mxu1 %v2774_v2 }
  0xce   : > { %2093 = vmatpush3.bf16.msra.mxu0 %v2371_v23  ;;  %v2838_v2 = vshrl.u32 %v1526_v1, 7 }
  0xcf   : > { %2133 = vmatpush3.bf16.msra.mxu1 %v2372_v24 }
  0xd0   : > { %v1730_v25 = vsub.s32 1, %v2838_v2 }
  0xd1   : > { %1428 = vmatmul.mubr.bf16.vlgmr.msra.gmra.mrb[32].mxu0 %v2786_v26  ;;  %v1763_v26 = vsub.s32 2, %v2838_v2 }
  0xd2   : > { %1492 = vmatmul.mubr.bf16.vlgmr.msra.gmra.mrb[32].mxu1 %v2789_v28  ;;  %1435 = vmatprep.mubr.bf16.mxu0 %v2792_v34  ;;  %v2850_v28 = vld [vmem:[%s3259_s4 + $0x8] sm:$0xff]  ;;  %v2853_v29 = vrot.slane %v2845_v27, %v1730_v25  ;;  %v2870_v34 = vrot.slane %v2867_v33, %v1730_v25 }
  0xd3   : > { %1499 = vmatprep.mubr.bf16.mxu1 %v2797_v38  ;;  %v2856_v30 = vrot.slane %v2845_v27, %v1763_v26  ;;  %v2859_v31 = vrot.slane %v2850_v28, %v1730_v25  ;;  %v2862_v32 = vrot.slane %v2850_v28, %v1763_v26  ;;  %v2873_v35 = vrot.slane %v2867_v33, %v1763_v26 }
  0xd9   : > { %1436 = vmatmul.mubr.bf16.gmra.mrb[36].mxu0 %v2806_v46 }
  0xda   : > { %1500 = vmatmul.mubr.bf16.gmra.mrb[36].mxu1 %v2809_v50  ;;  %1443 = vmatprep.mubr.bf16.mxu0 %v2812_v54 }
  0xdb   : > { %1507 = vmatprep.mubr.bf16.mxu1 %v2815_v56 }
  0xe1   : > { %1444 = vmatmul.mubr.bf16.gmra.mrb[40].mxu0 %v357_v3 }
  0xe2   : > { %1508 = vmatmul.mubr.bf16.gmra.mrb[40].mxu1 %v359_v5  ;;  %1451 = vmatprep.mubr.bf16.mxu0 %v362_v9 }
  0xe3   : > { %1515 = vmatprep.mubr.bf16.mxu1 %v364_v11 }
  0xe9   : > { %1452 = vmatmul.mubr.bf16.gmra.mrb[44].mxu0 %v361_v17 }
  0xea   : > { %1516 = vmatmul.mubr.bf16.gmra.mrb[44].mxu1 %v363_v18 }
 0x144   : > { %v2875_v36 = vpop.f32.mrb[0].mxu1  ;;  %v600_v38 = vpop.f32.mrb[0].mxu0 }
 0x145   : > { %v2162_v37 = vpop.f32.mrb[1].mxu1  ;;  %v602_v39 = vpop.f32.mrb[1].mxu0 }
 0x149   : > { %v2877_v42 = vpop.f32.mrb[2].mxu1 }
 0x14a   : > { %v2165_v43 = vpop.f32.mrb[3].mxu1 }
 0x14b   : > { %v606_v40 = vpop.f32.mrb[2].mxu0 }
 0x14c   : > { %v608_v41 = vpop.f32.mrb[3].mxu0 }
 0x14d   : > { %v2879_v46 = vpop.f32.mrb[4].mxu1 }
 0x14e   : > { %v2168_v47 = vpop.f32.mrb[5].mxu1 }
 0x14f   : > { %v612_v44 = vpop.f32.mrb[4].mxu0 }
 0x150   : > { %v614_v45 = vpop.f32.mrb[5].mxu0 }
 0x151   : > { %v2881_v50 = vpop.f32.mrb[6].mxu1 }
 0x152   : > { %v2171_v51 = vpop.f32.mrb[7].mxu1 }
 0x153   : > { %v618_v48 = vpop.f32.mrb[6].mxu0 }
 0x154   : > { %v620_v49 = vpop.f32.mrb[7].mxu0 }
 0x155   : > { %v2883_v54 = vpop.f32.mrb[8].mxu1 }
 0x156   : > { %v2174_v55 = vpop.f32.mrb[9].mxu1 }
 0x157   : > { %v624_v52 = vpop.f32.mrb[8].mxu0 }
 0x158   : > { %v626_v53 = vpop.f32.mrb[9].mxu0 }
 0x159   : > { %v2885_v58 = vpop.f32.mrb[10].mxu1 }
 0x15a   : > { %v2177_v59 = vpop.f32.mrb[11].mxu1 }
 0x15b   : > { %v630_v56 = vpop.f32.mrb[10].mxu0 }
 0x15c   : > { %v632_v57 = vpop.f32.mrb[11].mxu0 }
 0x15d   : > { %v2887_v62 = vpop.f32.mrb[12].mxu1 }
 0x15e   : > { %v2180_v63 = vpop.f32.mrb[13].mxu1 }
 0x15f   : > { %v636_v60 = vpop.f32.mrb[12].mxu0 }
 0x160   : > { %v638_v61 = vpop.f32.mrb[13].mxu0 }
 0x184   : > { %v1287_v3 = vpop.f32.mrb[16].mxu0 }
 0x185   : > { %v1288_v4 = vadd.f32 %v1287_v3, %v600_v38  ;;  %v1358_v0 = vpop.f32.mrb[16].mxu1  ;;  %v1289_v5 = vpop.f32.mrb[17].mxu0 }
 0x186   : > { %v1290_v6 = vadd.f32 %v1289_v5, %v602_v39  ;;  %v1360_v7 = vpop.f32.mrb[17].mxu1  ;;  %v1291_v8 = vpop.f32.mrb[18].mxu0 }
 0x187   : > { %v1359_v9 = vadd.f32 %v1358_v0, %v1288_v4  ;;  %v1292_v10 = vadd.f32 %v1291_v8, %v606_v40  ;;  %v1362_v11 = vpop.f32.mrb[18].mxu1  ;;  %v1293_v12 = vpop.f32.mrb[19].mxu0 }
 0x188   : > { %v1361_v13 = vadd.f32 %v1360_v7, %v1290_v6  ;;  %v1294_v14 = vadd.f32 %v1293_v12, %v608_v41  ;;  %v1364_v15 = vpop.f32.mrb[19].mxu1 }
 0x189   : > { %v2889_v16 = vadd.f32 %v1362_v11, %v1292_v10 }
 0x18a   : > { %v2891_v17 = vadd.f32 %v1364_v15, %v1294_v14 }
 0x18c   : > { %v1297_v18 = vpop.f32.mrb[20].mxu0 }
 0x18d   : > { %v1298_v19 = vadd.f32 %v1297_v18, %v612_v44  ;;  %v1368_v20 = vpop.f32.mrb[20].mxu1  ;;  %v1299_v21 = vpop.f32.mrb[21].mxu0 }
 0x18e   : > { %v1300_v22 = vadd.f32 %v1299_v21, %v614_v45  ;;  %v1370_v23 = vpop.f32.mrb[21].mxu1  ;;  %v1301_v24 = vpop.f32.mrb[22].mxu0 }
 0x18f   : > { %v2893_v1 = vadd.f32 %v1368_v20, %v1298_v19  ;;  %v1302_v25 = vadd.f32 %v1301_v24, %v618_v48  ;;  %v1372_v26 = vpop.f32.mrb[22].mxu1  ;;  %v1303_v37 = vpop.f32.mrb[23].mxu0 }
 0x190   : > { %v2895_v38 = vadd.f32 %v1370_v23, %v1300_v22  ;;  %v1304_v39 = vadd.f32 %v1303_v37, %v620_v49  ;;  %v1374_v40 = vpop.f32.mrb[23].mxu1 }
 0x191   : > { %v2897_v41 = vadd.f32 %v1372_v26, %v1302_v25 }
 0x192   : > { %v2899_v43 = vadd.f32 %v1374_v40, %v1304_v39 }
 0x194   : > { %v1307_v47 = vpop.f32.mrb[24].mxu0 }
 0x195   : > { %v1308_v44 = vadd.f32 %v1307_v47, %v624_v52  ;;  %v1378_v51 = vpop.f32.mrb[24].mxu1  ;;  %v1309_v55 = vpop.f32.mrb[25].mxu0  ;;  %v1528_v52 = vsub.s32 0, %v2838_v2 }
 0x196   : > { %v1310_v45 = vadd.f32 %v1309_v55, %v626_v53  ;;  %v1380_v59 = vpop.f32.mrb[25].mxu1  ;;  %v1311_v63 = vpop.f32.mrb[26].mxu0 }
 0x197   : > { %v2901_v3 = vadd.f32 %v1378_v51, %v1308_v44  ;;  %v1312_v48 = vadd.f32 %v1311_v63, %v630_v56  ;;  %v1382_v4 = vpop.f32.mrb[26].mxu1  ;;  %v1313_v0 = vpop.f32.mrb[27].mxu0  ;;  %v2915_v22 = vrot.slane %v2845_v27, %v1528_v52  ;;  %v2918_v23 = vrot.slane %v2850_v28, %v1528_v52 }
 0x198   : > { %v2903_v5 = vadd.f32 %v1380_v59, %v1310_v45  ;;  %v1314_v49 = vadd.f32 %v1313_v0, %v632_v57  ;;  %v1384_v6 = vpop.f32.mrb[27].mxu1  ;;  %v2928_v55 = vrot.slane %v2867_v33, %v1528_v52 }
 0x199   : > { %v2905_v7 = vadd.f32 %v1382_v4, %v1312_v48 }
 0x19a   : > { %v2907_v8 = vadd.f32 %v1384_v6, %v1314_v49 }
 0x19c   : > { %v1317_v10 = vpop.f32.mrb[28].mxu0 }
 0x19d   : > { %v1318_v11 = vadd.f32 %v1317_v10, %v636_v60  ;;  %v1388_v53 = vpop.f32.mrb[28].mxu1  ;;  %v1319_v12 = vpop.f32.mrb[29].mxu0  ;;  %v2921_v60 = vadd.f32 %v2915_v22, %v1359_v9  ;;  %v2932_v9 = vadd.f32 %v2915_v22, %v2889_v16 }
 0x19e   : > { %v1320_v14 = vadd.f32 %v1319_v12, %v638_v61  ;;  %v1390_v15 = vpop.f32.mrb[29].mxu1  ;;  %v1321_v18 = vpop.f32.mrb[30].mxu0  ;;  %v2924_v61 = vadd.f32 %v2918_v23, %v1361_v13 }
 0x19f   : > { %v2910_v56 = vadd.f32 %v1388_v53, %v1318_v11  ;;  %v1392_v19 = vpop.f32.mrb[30].mxu1  ;;  %v1322_v20 = vpop.f32.mrb[31].mxu0  ;;  %v1595_v45 = vmul.f32 %v2921_v60, %v2921_v60  ;;  %v1598_v52 = vmul.f32 %v2932_v9, %v2932_v9 }
 0x1a0   : > { %v2912_v21 = vadd.f32 %v1390_v15, %v1320_v14  ;;  %v1393_v57 = vpop.f32.mrb[31].mxu1  ;;  %v1596_v59 = vmul.f32 %v2924_v61, %v2924_v61  ;;  %v1559_v16 = vadd.f32 %v2924_v61, %v2921_v60  ;;  %v2958_v15 = vadd.f32 %v2915_v22, %v2893_v1 }
 0x1a2   : > { %v1616_v10 = vadd.f32 %v1596_v59, %v1595_v45 }
 0x1a4   : > { %v2094_v2 = vpop.f32.mrb[32].mxu0 }
 0x1a5   : > { %v2134_v24 = vpop.f32.mrb[32].mxu1  ;;  %v2095_v25 = vpop.f32.mrb[33].mxu0 }
 0x1a6   : > { %v2096_v26 = vadd.f32 %v2095_v25, %v2094_v2  ;;  %v2135_v37 = vpop.f32.mrb[33].mxu1  ;;  %v2097_v39 = vpop.f32.mrb[34].mxu0 }
 0x1a7   : > { %v2136_v40 = vadd.f32 %v2135_v37, %v2134_v24  ;;  %v2137_v47 = vpop.f32.mrb[34].mxu1  ;;  %v2098_v44 = vpop.f32.mrb[35].mxu0  ;;  %v2966_v24 = vadd.f32 %v2918_v23, %v2895_v38 }
 0x1a8   : > { %v1430_v27 = vadd.f32 %v2096_v26, %v2875_v36  ;;  %v2099_v51 = vadd.f32 %v2098_v44, %v2097_v39  ;;  %v2138_v28 = vpop.f32.mrb[35].mxu1  ;;  %v2941_v36 = vadd.f32 %v2918_v23, %v2891_v17  ;;  %v2971_v39 = vadd.f32 %v2915_v22, %v2897_v41 }
 0x1a9   : > { %v2139_v13 = vadd.f32 %v2138_v28, %v2137_v47 }
 0x1aa   : > { %v1494_v63 = vadd.f32 %v2136_v40, %v1430_v27  ;;  %v1433_v48 = vadd.f32 %v2099_v51, %v2877_v42  ;;  %v1563_v57 = vadd.f32 %v2941_v36, %v2932_v9  ;;  %v1599_v2 = vmul.f32 %v2941_v36, %v2941_v36 }
 0x1ab   : > { %v2975_v40 = vadd.f32 %v2918_v23, %v2899_v43  ;;  %v1567_v43 = vadd.f32 %v2966_v24, %v2958_v15 }
 0x1ac   : > { %v1497_v33 = vadd.f32 %v2139_v13, %v1433_v48  ;;  %v2100_v4 = vpop.f32.mrb[36].mxu0  ;;  %v2944_v0 = vadd.f32 %v2928_v55, %v1494_v63  ;;  %v1620_v13 = vadd.f32 %v1599_v2, %v1598_v52  ;;  %v1601_v48 = vmul.f32 %v2958_v15, %v2958_v15 }
 0x1ad   : > { %v2140_v49 = vpop.f32.mrb[36].mxu1  ;;  %v2101_v6 = vpop.f32.mrb[37].mxu0  ;;  %v1605_v63 = vmul.f32 %v2975_v40, %v2975_v40  ;;  %v2998_v52 = vadd.f32 %v2915_v22, %v2901_v3 }
 0x1ae   : > { %v2951_v42 = vadd.f32 %v2928_v55, %v1497_v33  ;;  %v2102_v11 = vadd.f32 %v2101_v6, %v2100_v4  ;;  %v2141_v17 = vpop.f32.mrb[37].mxu1  ;;  %v2103_v53 = vpop.f32.mrb[38].mxu0  ;;  %v1560_v12 = vadd.f32 %v1559_v16, %v2944_v0  ;;  %v1597_v14 = vmul.f32 %v2944_v0, %v2944_v0 }
 0x1af   : > { %v2142_v18 = vadd.f32 %v2141_v17, %v2140_v49  ;;  %v2143_v19 = vpop.f32.mrb[38].mxu1  ;;  %v2104_v20 = vpop.f32.mrb[39].mxu0 }
 0x1b0   : > { %v1438_v25 = vadd.f32 %v2102_v11, %v2879_v46  ;;  %v2105_v26 = vadd.f32 %v2104_v20, %v2103_v53  ;;  %v2144_v37 = vpop.f32.mrb[39].mxu1  ;;  %1561 = vadd.xlane.f32.xlu0 %v1560_v12  ;;  %v1617_v1 = vadd.f32 %v1616_v10, %v1597_v14  ;;  %v1564_v38 = vadd.f32 %v1563_v57, %v2951_v42 }
 0x1b1   : > { %v2145_v47 = vadd.f32 %v2144_v37, %v2143_v19  ;;  %v1600_v46 = vmul.f32 %v2951_v42, %v2951_v42  ;;  %v1571_v12 = vadd.f32 %v2975_v40, %v2971_v39  ;;  %v1602_v14 = vmul.f32 %v2966_v24, %v2966_v24 }
 0x1b2   : > { %v1502_v44 = vadd.f32 %v2142_v18, %v1438_v25  ;;  %v1441_v27 = vadd.f32 %v2105_v26, %v2881_v50  ;;  %1618 = vadd.xlane.f32.xlu1 %v1617_v1  ;;  %v1604_v50 = vmul.f32 %v2971_v39, %v2971_v39  ;;  %v3006_v18 = vadd.f32 %v2918_v23, %v2903_v5 }
 0x1b3   : > { %v1621_v10 = vadd.f32 %v1620_v13, %v1600_v46 }
 0x1b4   : > { %v2982_v51 = vadd.f32 %v2928_v55, %v1502_v44  ;;  %v1505_v28 = vadd.f32 %v2145_v47, %v1441_v27  ;;  %v2106_v41 = vpop.f32.mrb[40].mxu0  ;;  %1565 = vadd.xlane.f32.xlu0 %v1564_v38  ;;  %v1628_v25 = vadd.f32 %v1605_v63, %v1604_v50  ;;  %v1624_v44 = vadd.f32 %v1602_v14, %v1601_v48 }
 0x1b5   : > { %v2146_v45 = vpop.f32.mrb[40].mxu1  ;;  %v2107_v59 = vpop.f32.mrb[41].mxu0  ;;  %v3021_v27 = vadd.f32 %v2918_v23, %v2907_v8 }
 0x1b6   : > { %v2993_v33 = vadd.f32 %v2928_v55, %v1505_v28  ;;  %v2108_v4 = vadd.f32 %v2107_v59, %v2106_v41  ;;  %v2147_v16 = vpop.f32.mrb[41].mxu1  ;;  %v2109_v49 = vpop.f32.mrb[42].mxu0  ;;  %v1568_v6 = vadd.f32 %v1567_v43, %v2982_v51  ;;  %v1603_v5 = vmul.f32 %v2982_v51, %v2982_v51 }
 0x1b7   : > { %v2148_v11 = vadd.f32 %v2147_v16, %v2146_v45  ;;  %v2149_v17 = vpop.f32.mrb[42].mxu1  ;;  %v2110_v53 = vpop.f32.mrb[43].mxu0  ;;  %v1575_v28 = vadd.f32 %v3006_v18, %v2998_v52  ;;  %v1607_v16 = vmul.f32 %v2998_v52, %v2998_v52 }
 0x1b8   : > { %v1446_v19 = vadd.f32 %v2108_v4, %v2883_v54  ;;  %v2111_v20 = vadd.f32 %v2110_v53, %v2109_v49  ;;  %v2150_v57 = vpop.f32.mrb[43].mxu1  ;;  %1569 = vadd.xlane.f32.xlu1 %v1568_v6  ;;  %1622 = vadd.xlane.f32.xlu0 %v1621_v10  ;;  %v1606_v2 = vmul.f32 %v2993_v33, %v2993_v33 }
 0x1b9   : > { %v2151_v3 = vadd.f32 %v2150_v57, %v2149_v17  ;;  %v1572_v1 = vadd.f32 %v1571_v12, %v2993_v33  ;;  %v3017_v54 = vadd.f32 %v2915_v22, %v2905_v7  ;;  %v1625_v8 = vadd.f32 %v1624_v44, %v1603_v5 }
 0x1ba   : > { %v1510_v26 = vadd.f32 %v2148_v11, %v1446_v19  ;;  %v1449_v37 = vadd.f32 %v2111_v20, %v2885_v58  ;;  %v1629_v47 = vadd.f32 %v1628_v25, %v1606_v2  ;;  %v1608_v49 = vmul.f32 %v3006_v18, %v3006_v18 }
 0x1bb   : > { %v3038_v6 = vadd.f32 %v2915_v22, %v2910_v56  ;;  %v3042_v10 = vadd.f32 %v2918_v23, %v2912_v21  ;;  %v1579_v53 = vadd.f32 %v3021_v27, %v3017_v54  ;;  %v1610_v22 = vmul.f32 %v3017_v54, %v3017_v54 }
 0x1bc   : > { %v3024_v38 = vadd.f32 %v2928_v55, %v1510_v26  ;;  %v1513_v46 = vadd.f32 %v2151_v3, %v1449_v37  ;;  %v2112_v58 = vpop.f32.mrb[44].mxu0  ;;  %1573 = vadd.xlane.f32.xlu1 %v1572_v1  ;;  %1630 = vadd.xlane.f32.xlu0 %v1629_v47  ;;  %v1632_v56 = vadd.f32 %v1608_v49, %v1607_v16 }
 0x1bd   : > { %v2152_v41 = vpop.f32.mrb[44].mxu1  ;;  %v2113_v43 = vpop.f32.mrb[45].mxu0  ;;  %v1611_v21 = vmul.f32 %v3021_v27, %v3021_v27  ;;  %v1583_v23 = vadd.f32 %v3042_v10, %v3038_v6  ;;  %v1613_v20 = vmul.f32 %v3038_v6, %v3038_v6  ;;  %v1614_v57 = vmul.f32 %v3042_v10, %v3042_v10 }
 0x1be   : > { %v3029_v7 = vadd.f32 %v2928_v55, %v1513_v46  ;;  %v2114_v13 = vadd.f32 %v2113_v43, %v2112_v58  ;;  %v2153_v45 = vpop.f32.mrb[45].mxu1  ;;  %v2115_v59 = vpop.f32.mrb[46].mxu0  ;;  %v1576_v50 = vadd.f32 %v1575_v28, %v3024_v38  ;;  %v1609_v19 = vmul.f32 %v3024_v38, %v3024_v38 }
 0x1bf   : > { %v2154_v63 = vadd.f32 %v2153_v45, %v2152_v41  ;;  %v2155_v48 = vpop.f32.mrb[46].mxu1  ;;  %v2116_v4 = vpop.f32.mrb[47].mxu0  ;;  %v1640_v26 = vadd.f32 %v1614_v57, %v1613_v20  ;;  %v1636_v37 = vadd.f32 %v1611_v21, %v1610_v22 }
 0x1c0   : > { %v1454_v11 = vadd.f32 %v2114_v13, %v2887_v62  ;;  %v2156_v17 = vpop.f32.mrb[47].mxu1  ;;  %1626 = vadd.xlane.f32.xlu1 %v1625_v8  ;;  %1577 = vadd.xlane.f32.xlu0 %v1576_v50  ;;  %v1580_v14 = vadd.f32 %v1579_v53, %v3029_v7  ;;  %v1633_v3 = vadd.f32 %v1632_v56, %v1609_v19 }
 0x1c2   : > { %v1518_v12 = vadd.f32 %v2154_v63, %v1454_v11 }
 0x1c4   : > { %v3055_v62 = vadd.f32 %v2928_v55, %v1518_v12  ;;  %1581 = vadd.xlane.f32.xlu1 %v1580_v14  ;;  %v1612_v55 = vmul.f32 %v3029_v7, %v3029_v7 }
 0x1c6   : > { %v1584_v2 = vadd.f32 %v1583_v23, %v3055_v62  ;;  %v1615_v25 = vmul.f32 %v3055_v62, %v3055_v62  ;;  %v1637_v5 = vadd.f32 %v1636_v37, %v1612_v55 }
 0x1c8   : > { %1634 = vadd.xlane.f32.xlu1 %v1633_v3  ;;  %1585 = vadd.xlane.f32.xlu0 %v1584_v2  ;;  %v1641_v1 = vadd.f32 %v1640_v26, %v1615_v25 }
 0x1cc   : > { %1642 = vadd.xlane.f32.xlu1 %v1641_v1  ;;  %1638 = vadd.xlane.f32.xlu0 %v1637_v5 }
 0x23d   : > { %v1562_v47 = vpop.xlane.xlu0 %1561 }
 0x23e   : > { %v1588_v44 = vmul.f32 0.0026041667, %v1562_v47 }
 0x23f   : > { %v1619_v46 = vpop.xlane.xlu1 %1618 }
 0x240   : > { %v1644_v58 = vmul.f32 0.0026041667, %v1619_v46  ;;  %v1651_v28 = vmul.f32 %v1588_v44, %v1588_v44  ;;  %v1672_v25 = vsub.f32 %v2921_v60, %v1588_v44  ;;  %v1673_v55 = vsub.f32 %v2924_v61, %v1588_v44 }
 0x241   : > { %v1566_v41 = vpop.xlane.xlu0 %1565  ;;  %v1674_v26 = vsub.f32 %v2944_v0, %v1588_v44 }
 0x242   : > { %v1589_v43 = vmul.f32 0.0026041667, %v1566_v41  ;;  %v1658_v13 = vsub.f32 %v1644_v58, %v1651_v28 }
 0x244   : > { %v1665_v45 = vmax.f32 %v1658_v13, 0.0  ;;  %v1652_v50 = vmul.f32 %v1589_v43, %v1589_v43  ;;  %v1675_v13 = vsub.f32 %v2932_v9, %v1589_v43 }
 0x245   : > { %v1570_v59 = vpop.xlane.xlu1 %1569  ;;  %v1623_v8 = vpop.xlane.xlu0 %1622 }
 0x246   : > { %v1645_v63 = vmul.f32 0.0026041667, %v1623_v8  ;;  %v1693_v48 = vadd.f32 1e-05, %v1665_v45  ;;  %v3068_v49 = vmul.f32 0.0026041667, %v1570_v59  ;;  %v1676_v45 = vsub.f32 %v2941_v36, %v1589_v43 }
 0x247   : > { %v1677_v8 = vsub.f32 %v2951_v42, %v1589_v43 }
 0x248   : > { %v1659_v4 = vsub.f32 %v1645_v63, %v1652_v50  ;;  %2373 = vrsqrt.f32 %v1693_v48  ;;  %v1653_v22 = vmul.f32 %v3068_v49, %v3068_v49 }
 0x249   : > { %v1574_v16 = vpop.xlane.xlu1 %1573  ;;  %v1631_v53 = vpop.xlane.xlu0 %1630 }
 0x24a   : > { %v1666_v11 = vmax.f32 %v1659_v4, 0.0  ;;  %v3070_v17 = vmul.f32 0.0026041667, %v1574_v16  ;;  %v1647_v19 = vmul.f32 0.0026041667, %v1631_v53 }
 0x24c   : > { %v1694_v12 = vadd.f32 1e-05, %v1666_v11  ;;  %v1654_v14 = vmul.f32 %v3070_v17, %v3070_v17 }
 0x24d   : > { %v1627_v56 = vpop.xlane.xlu1 %1626  ;;  %v1578_v57 = vpop.xlane.xlu0 %1577 }
 0x24e   : > { %2375 = vrsqrt.f32 %v1694_v12  ;;  %v1646_v21 = vmul.f32 0.0026041667, %v1627_v56  ;;  %v1661_v23 = vsub.f32 %v1647_v19, %v1654_v14  ;;  %v3080_v47 = vmul.f32 0.0026041667, %v1578_v57 }
 0x24f   : > { %v1681_v57 = vsub.f32 %v2971_v39, %v3070_v17  ;;  %v1682_v39 = vsub.f32 %v2975_v40, %v3070_v17 }
 0x250   : > { %v1660_v20 = vsub.f32 %v1646_v21, %v1653_v22  ;;  %v1668_v3 = vmax.f32 %v1661_v23, 0.0  ;;  %v1655_v9 = vmul.f32 %v3080_v47, %v3080_v47 }
 0x251   : > { %v1582_v2 = vpop.xlane.xlu1 %1581 }
 0x252   : > { %v1667_v37 = vmax.f32 %v1660_v20, 0.0  ;;  %v2374_v1 = vpop.eup %2373  ;;  %v1696_v5 = vadd.f32 1e-05, %v1668_v3  ;;  %v3088_v50 = vmul.f32 0.0026041667, %v1582_v2 }
 0x253   : > { %v1707_v46 = vmul.f32 %v2374_v1, %v1672_v25  ;;  %v1708_v58 = vmul.f32 %v2374_v1, %v1673_v55  ;;  %v1709_v28 = vmul.f32 %v2374_v1, %v1674_v26 }
 0x254   : > { %v1695_v41 = vadd.f32 1e-05, %v1667_v37  ;;  %2377 = vrsqrt.f32 %v1696_v5  ;;  %v1656_v2 = vmul.f32 %v3088_v50, %v3088_v50  ;;  %v1683_v5 = vsub.f32 %v2993_v33, %v3070_v17 }
 0x255   : > { %v1635_v60 = vpop.xlane.xlu1 %1634  ;;  %v1586_v59 = vpop.xlane.xlu0 %1585  ;;  %v1740_v61 = vmul.f32 %v2853_v29, %v1707_v46  ;;  %v1741_v0 = vmul.f32 %v2859_v31, %v1708_v58  ;;  %v1742_v44 = vmul.f32 %v2870_v34, %v1709_v28 }
 0x256   : > { %2379 = vrsqrt.f32 %v1695_v41  ;;  %v1648_v63 = vmul.f32 0.0026041667, %v1635_v60  ;;  %v3095_v11 = vmul.f32 0.0026041667, %v1586_v59  ;;  %v1678_v41 = vsub.f32 %v2958_v15, %v3068_v49 }
 0x257   : > { %v1773_v48 = vadd.f32 %v2856_v30, %v1740_v61  ;;  %v1774_v4 = vadd.f32 %v2862_v32, %v1741_v0  ;;  %v1775_v16 = vadd.f32 %v2873_v35, %v1742_v44 }
 0x258   : > { %v2376_v36 = vpop.eup %2375  ;;  %v1662_v19 = vsub.f32 %v1648_v63, %v1655_v9  ;;  %v1657_v3 = vmul.f32 %v3095_v11, %v3095_v11 }
 0x259   : > { %v1710_v53 = vmul.f32 %v2376_v36, %v1675_v13  ;;  %v1711_v12 = vmul.f32 %v2376_v36, %v1676_v45  ;;  %v1712_v14 = vmul.f32 %v2376_v36, %v1677_v8  ;;  %v1643_v42 = vpop.xlane.xlu1 %1642  ;;  %v1639_v43 = vpop.xlane.xlu0 %1638  ;;  %1794 = vst [vmem:[%s3099_s16] sm:$0xff] %v1773_v48  ;;  %1795 = vst [vmem:[%s3099_s16 + $0x8] sm:$0xff] %v1774_v4 }
 0x25a   : > { %1796 = vst [vmem:[%s3099_s16 + $0x10] sm:$0xff] %v1775_v16  ;;  %v1650_v56 = vmul.f32 0.0026041667, %v1643_v42  ;;  %v1669_v20 = vmax.f32 %v1662_v19, 0.0  ;;  %v1649_v25 = vmul.f32 0.0026041667, %v1639_v43  ;;  %v1679_v13 = vsub.f32 %v2966_v24, %v3068_v49 }
 0x25b   : > { %v1743_v22 = vmul.f32 %v2853_v29, %v1710_v53  ;;  %v1744_v21 = vmul.f32 %v2859_v31, %v1711_v12  ;;  %v1745_v23 = vmul.f32 %v2870_v34, %v1712_v14  ;;  %v1680_v45 = vsub.f32 %v2982_v51, %v3068_v49 }
 0x25c   : > { %v1697_v1 = vadd.f32 1e-05, %v1669_v20  ;;  %v1664_v46 = vsub.f32 %v1650_v56, %v1657_v3  ;;  %v1663_v58 = vsub.f32 %v1649_v25, %v1656_v2  ;;  %v1684_v42 = vsub.f32 %v2998_v52, %v3080_v47 }
 0x25d   : > { %v1776_v55 = vadd.f32 %v2856_v30, %v1743_v22  ;;  %v1777_v26 = vadd.f32 %v2862_v32, %v1744_v21  ;;  %v1778_v37 = vadd.f32 %v2873_v35, %v1745_v23  ;;  %v1685_v43 = vsub.f32 %v3006_v18, %v3080_v47 }
 0x25e   : > { %v2378_v28 = vpop.eup %2377  ;;  %2381 = vrsqrt.f32 %v1697_v1  ;;  %v1671_v17 = vmax.f32 %v1664_v46, 0.0  ;;  %v1670_v8 = vmax.f32 %v1663_v58, 0.0  ;;  %v1686_v56 = vsub.f32 %v3024_v38, %v3080_v47 }
 0x25f   : > { %1797 = vst [vmem:[%s3099_s16 + $0x18] sm:$0xff] %v1776_v55  ;;  %1798 = vst [vmem:[%s3099_s16 + $0x20] sm:$0xff] %v1777_v26  ;;  %v1716_v60 = vmul.f32 %v2378_v28, %v1681_v57  ;;  %v1717_v59 = vmul.f32 %v2378_v28, %v1682_v39  ;;  %v1718_v33 = vmul.f32 %v2378_v28, %v1683_v5 }
 0x260   : > { %1799 = vst [vmem:[%s3099_s16 + $0x28] sm:$0xff] %v1778_v37  ;;  %v2380_v40 = vpop.eup %2379  ;;  %v1699_v49 = vadd.f32 1e-05, %v1671_v17  ;;  %v1698_v48 = vadd.f32 1e-05, %v1670_v8  ;;  %v1687_v57 = vsub.f32 %v3017_v54, %v3088_v50  ;;  %v1688_v18 = vsub.f32 %v3021_v27, %v3088_v50 }
 0x261   : > { %v1713_v61 = vmul.f32 %v2380_v40, %v1678_v41  ;;  %v1714_v0 = vmul.f32 %v2380_v40, %v1679_v13  ;;  %v1715_v44 = vmul.f32 %v2380_v40, %v1680_v45  ;;  %v1749_v15 = vmul.f32 %v2853_v29, %v1716_v60 }
 0x262   : > { %v1750_v24 = vmul.f32 %v2859_v31, %v1717_v59  ;;  %v1751_v51 = vmul.f32 %v2870_v34, %v1718_v33  ;;  %2383 = vrsqrt.f32 %v1699_v49  ;;  %v1690_v38 = vsub.f32 %v3038_v6, %v3095_v11 }
 0x263   : > { %v1746_v63 = vmul.f32 %v2853_v29, %v1713_v61  ;;  %v1747_v9 = vmul.f32 %v2859_v31, %v1714_v0  ;;  %v1748_v36 = vmul.f32 %v2870_v34, %v1715_v44  ;;  %v1782_v4 = vadd.f32 %v2856_v30, %v1749_v15 }
 0x264   : > { %v1783_v16 = vadd.f32 %v2862_v32, %v1750_v24  ;;  %v1784_v53 = vadd.f32 %v2873_v35, %v1751_v51  ;;  %2385 = vrsqrt.f32 %v1698_v48  ;;  %v1691_v47 = vsub.f32 %v3042_v10, %v3095_v11 }
 0x265   : > { %v1779_v12 = vadd.f32 %v2856_v30, %v1746_v63  ;;  %v1780_v14 = vadd.f32 %v2862_v32, %v1747_v9  ;;  %v1781_v19 = vadd.f32 %v2873_v35, %v1748_v36  ;;  %1803 = vst [vmem:[%s3099_s16 + $0x48] sm:$0xff] %v1782_v4  ;;  %v1692_v54 = vsub.f32 %v3055_v62, %v3095_v11 }
 0x266   : > { %1804 = vst [vmem:[%s3099_s16 + $0x50] sm:$0xff] %v1783_v16  ;;  %1805 = vst [vmem:[%s3099_s16 + $0x58] sm:$0xff] %v1784_v53  ;;  %v1689_v55 = vsub.f32 %v3029_v7, %v3088_v50 }
 0x267   : > { %1800 = vst [vmem:[%s3099_s16 + $0x30] sm:$0xff] %v1779_v12  ;;  %1801 = vst [vmem:[%s3099_s16 + $0x38] sm:$0xff] %v1780_v14 }
 0x268   : > { %1802 = vst [vmem:[%s3099_s16 + $0x40] sm:$0xff] %v1781_v19  ;;  %v2382_v22 = vpop.eup %2381 }
 0x269   : > { %v1719_v21 = vmul.f32 %v2382_v22, %v1684_v42  ;;  %v1720_v23 = vmul.f32 %v2382_v22, %v1685_v43  ;;  %v1721_v20 = vmul.f32 %v2382_v22, %v1686_v56 }
 0x26b   : > { %v1752_v3 = vmul.f32 %v2853_v29, %v1719_v21  ;;  %v1753_v2 = vmul.f32 %v2859_v31, %v1720_v23  ;;  %v1754_v52 = vmul.f32 %v2870_v34, %v1721_v20 }
 0x26c   : > { %v2384_v25 = vpop.eup %2383 }
 0x26d   : > { %v1785_v26 = vadd.f32 %v2856_v30, %v1752_v3  ;;  %v1786_v37 = vadd.f32 %v2862_v32, %v1753_v2  ;;  %v1787_v1 = vadd.f32 %v2873_v35, %v1754_v52  ;;  %v1725_v39 = vmul.f32 %v2384_v25, %v1690_v38 }
 0x26e   : > { %v2386_v27 = vpop.eup %2385  ;;  %v1726_v5 = vmul.f32 %v2384_v25, %v1691_v47  ;;  %v1727_v6 = vmul.f32 %v2384_v25, %v1692_v54 }
 0x26f   : > { %1806 = vst [vmem:[%s3099_s16 + $0x60] sm:$0xff] %v1785_v26  ;;  %1807 = vst [vmem:[%s3099_s16 + $0x68] sm:$0xff] %v1786_v37  ;;  %v1722_v10 = vmul.f32 %v2386_v27, %v1687_v57  ;;  %v1723_v62 = vmul.f32 %v2386_v27, %v1688_v18  ;;  %v1724_v11 = vmul.f32 %v2386_v27, %v1689_v55 }
 0x270   : > { %1808 = vst [vmem:[%s3099_s16 + $0x70] sm:$0xff] %v1787_v1  ;;  %v1758_v7 = vmul.f32 %v2853_v29, %v1725_v39  ;;  %v1759_v50 = vmul.f32 %v2859_v31, %v1726_v5  ;;  %v1760_v46 = vmul.f32 %v2870_v34, %v1727_v6  ;;  %1822 = sbr.rel (!%p3275_p10) target bundleno = 660 (0x294), region = 52 }
 0x271   : > { %v1755_v58 = vmul.f32 %v2853_v29, %v1722_v10  ;;  %v1756_v28 = vmul.f32 %v2859_v31, %v1723_v62  ;;  %v1757_v41 = vmul.f32 %v2870_v34, %v1724_v11 }
 0x272   : > { %v1791_v13 = vadd.f32 %v2856_v30, %v1758_v7  ;;  %v1792_v45 = vadd.f32 %v2862_v32, %v1759_v50  ;;  %v1793_v40 = vadd.f32 %v2873_v35, %v1760_v46 }
 0x273   : > { %v1788_v60 = vadd.f32 %v2856_v30, %v1755_v58  ;;  %v1789_v59 = vadd.f32 %v2862_v32, %v1756_v28  ;;  %v1790_v33 = vadd.f32 %v2873_v35, %v1757_v41 }
 0x274   : > { %1812 = vst [vmem:[%s3099_s16 + $0x90] sm:$0xff] %v1791_v13  ;;  %1813 = vst [vmem:[%s3099_s16 + $0x98] sm:$0xff] %v1792_v45 }
 0x275   : > { %1814 = vst [vmem:[%s3099_s16 + $0xa0] sm:$0xff] %v1793_v40  ;;  %1809 = vst [vmem:[%s3099_s16 + $0x78] sm:$0xff] %v1788_v60 }
 0x276   : > { %1810 = vst [vmem:[%s3099_s16 + $0x80] sm:$0xff] %v1789_v59  ;;  %1811 = vst [vmem:[%s3099_s16 + $0x88] sm:$0xff] %v1790_v33 }
 0x277   : > { %s3284_s8 = smov (!%p1825_p1, %s1824_s8), 7 }
 0x278   : > { %s3196_s17 = smul.u32 384, %s3284_s8 }
 0x27a   : > { %s1830_s28 = ssub.s32 2688, %s3196_s17 }
 0x27b   : > { %1831 = vsyncadd %s1816_s23, %s1830_s28  ;;  %p2061_p4 = scmp.ne.s32.totalorder %s3196_s17, 0  ;;  %s2201_s25 = smul.u32 2688, %s2577_s22 }
 0x27c   : > { %s1837_s30 = sshll.u32 %s3099_s16, 4  ;;  %s2523_s14 = smov [#allocation7]   ;;  %s3209_s30 = int_to_ptr.vmem [resolvable:$true] %s1837_s30 }
 0x27d   : > { %s3207_s7 = scalar_lea.hbm %s3260_s5, %s2201_s25  ;;  %s2443_s12 = scalar_lea.vmem %s3209_s30, %s3196_s17 }
 0x27e   : > { %p2444_p5 = scmp.ne.s32.totalorder %s3209_s30, %s2443_s12  ;;  %s2447_s15 = sshll.u32 %s2523_s14, 4  ;;  %s2448_s15 = int_to_ptr.vmem [resolvable:$false] %s2447_s15 }
 0x27f   : > { %s2449_s22 = scalar_lea.vmem %s2448_s15, 5376  ;;  %p2450_p2 = scmp.lt.s32.totalorder %s3209_s30, %s2448_s15 }
 0x280   : > { %p2445_p11 = pnand %p2444_p5, %p2061_p4  ;;  %p2451_p3 = scmp.lt.s32.totalorder %s2449_s22, %s2443_s12 }
 0x282   : > { %p2446_p12 = pneg %p2445_p11  ;;  %p2452_p13 = por %p2451_p3, %p2450_p2 }
 0x284   : > { %p2453_p7 = pnand %p2452_p13, %p2446_p12 }
 0x286   : > { %2456 = shalt.err (!%p2453_p7)
}
 0x287   : > { %s2457_s9 = scalar_lea.hbm %s3207_s7, %s3196_s17  ;;  %s2461_s16 = scalar_lea.hbm %s3260_s5, 4992 }
 0x288   : > { %p2458_p6 = scmp.ne.s32.totalorder %s3207_s7, %s2457_s9  ;;  %p2462_p10 = scmp.lt.u32.totalorder %s3207_s7, %s3260_s5 }
 0x289   : > { %p2463_p1 = scmp.lt.u32.totalorder %s2461_s16, %s2457_s9  ;;  %p2465_p11 = scmp.lt.u32.totalorder %s2457_s9, %s3207_s7 }
 0x28a   : > { %p2459_p8 = pnand %p2458_p6, %p2061_p4 }
 0x28b   : > { %p2464_p5 = por %p2463_p1, %p2462_p10 }
 0x28c   : > { %p2460_p9 = pneg %p2459_p8 }
 0x28d   : > { %p2466_p12 = por %p2465_p11, %p2464_p5 }
 0x28f   : > { %p2467_p2 = pnand %p2466_p12, %p2460_p9 }
 0x291   : > { %2470 = shalt.err (!%p2467_p2)
}
 0x292   : > { %s2524_s25 = smov 384   ;;  %s2525_s26 = smov 24  }
 0x293   : > { %1843 = dma.vmem_to_hbm [thread:$0]  (%p2061_p4), %s3209_s30, %s3196_s17, %s3207_s7, %s1816_s23, %s2524_s25, %s2524_s25, %s2525_s26  }
 0x294 PF: > { %s1852_s11 = sand.u32 1, %s2501_s18   ;;  %p3276_p3 = scmp.ne.s32.totalorder %s3267_s6, 0 }
 0x295   : > { %s1853_s12 = scalar_lea.sflag [#allocation4], %s1852_s11 }
 0x296   : > { %p2196_p13 = pnand %p1935_p0, %p3276_p3 }
 0x298   : > { %2496 = dma.done.wait (!%p2196_p13), %s1853_s12, 2688  }
 0x299   : > { %2498 = vsyncadd (!%p2196_p13), %s1853_s12, 4294964608  ;;  %p19_p7 = scmp.ge.s32.totalorder %s2581_s24, 4   ;;  %s3277_s18 = smov %s2505_s19 }
 0x29a   : > { %s3278_s19 = smov %s2509_s20  ;;  %s3279_s20 = smov %s2593_s27 }
 0x29b   : > { %s3280_s21 = smov %s2581_s24  ;;  %21 = sbr.rel (!%p19_p7) target bundleno = 6 (0x6), region = 92 }
 0x2a2   :  { %1858 = vsyncpa [#allocation3], 1 }
 0x2a3   :  { %1860 = vsyncpa [#allocation3 + $0x1], 1 }
 0x2a4   :  { %1861 = vsyncpa [#allocation6], 1 }
 0x2a5   :  { %1862 = vsyncpa [#allocation4], 1 }
 0x2a6   :  { %1864 = vsyncpa [#allocation4 + $0x1], 1 }

</bundles_post_ra>
